<compile_context>
chip_gen: v5e
topology: v5e:2x2
jax: 0.10.0
libtpu: 0.0.40
codegen_flags: <defaults>
</compile_context>

<pallas_src>
import functools

import jax
import jax.numpy as jnp
from jax.experimental import pallas as pl
from jax.experimental.pallas import tpu as pltpu


# ---------------------------------------------------------------------------
# Kernel
# ---------------------------------------------------------------------------
def mlp_ppo_kernel(x_ref, w1_ref, b1_ref, w2_ref, b2_ref, wh_ref, bh_ref,
                   out_ref):
    """One batch tile: three MXU matmuls (heads fused), ReLUs on the VPU.

    Matmuls accumulate in f32 (`preferred_element_type`); bias add + ReLU stay
    in f32; activations are cast back to the storage dtype (f32 or bf16)
    before feeding the next MXU pass.
    """
    compute_dtype = w1_ref.dtype

    x = x_ref[...]                                            # (TB, K1)

    h1 = jnp.dot(x, w1_ref[...], preferred_element_type=jnp.float32)
    h1 = jnp.maximum(h1 + b1_ref[...], 0.0)                   # f32 ReLU
    h1 = h1.astype(compute_dtype)

    h2 = jnp.dot(h1, w2_ref[...], preferred_element_type=jnp.float32)
    h2 = jnp.maximum(h2 + b2_ref[...], 0.0)                   # f32 ReLU
    h2 = h2.astype(compute_dtype)

    # Fused policy+value head, lane-dense (TB, OUT_PAD) output slab.
    out = jnp.dot(h2, wh_ref[...], preferred_element_type=jnp.float32)
    out_ref[...] = (out + bh_ref[...]).astype(out_ref.dtype)


# ---------------------------------------------------------------------------
# Parameter packing (offline, layout plumbing only)
# ---------------------------------------------------------------------------
def _round_up(n, m):
    return ((n + m - 1) // m) * m


def pack_params(params, compute_dtype=jnp.float32):
    """Packs PyTorch-style (transposed) params into MXU/lane-friendly layout.

    * w1 rows zero-padded so K (= obs_dim) is a multiple of 128.
    * policy & value heads concatenated into one weight, padded to 128 lanes.
    * weights stored in `compute_dtype` (f32 or bf16); biases stay f32.
    """
    obs_dim, h1 = params["w1"].shape
    h2 = params["w2"].shape[1]
    num_outputs = params["wp"].shape[1]

    k1 = _round_up(obs_dim, 128)
    out_pad = _round_up(num_outputs + 1, 128)

    w1 = jnp.zeros((k1, h1), jnp.float32).at[:obs_dim, :].set(params["w1"])

    wh = jnp.zeros((h2, out_pad), jnp.float32)
    wh = wh.at[:, :num_outputs].set(params["wp"])
    wh = wh.at[:, num_outputs:num_outputs + 1].set(params["wv"])
    bh = jnp.zeros((1, out_pad), jnp.float32)
    bh = bh.at[:, :num_outputs].set(params["bp"])
    bh = bh.at[:, num_outputs:num_outputs + 1].set(params["bv"])

    return dict(
        w1=w1.astype(compute_dtype),
        b1=params["b1"].astype(jnp.float32),
        w2=params["w2"].astype(compute_dtype),
        b2=params["b2"].astype(jnp.float32),
        wh=wh.astype(compute_dtype),
        bh=bh.astype(jnp.float32),
        obs_dim=obs_dim,
        num_outputs=num_outputs,
    )


# ---------------------------------------------------------------------------
# Forward wrapper
# ---------------------------------------------------------------------------
def mlp_ppo_forward(x, packed, *, tb=128):
    """Runs the fused MLP Pallas kernel.

    x: (B, obs_dim) float32
    returns (policy_logits: (B, num_outputs), value: (B, 1))
    """
    B, obs_dim = x.shape
    assert obs_dim == packed["obs_dim"]
    num_outputs = packed["num_outputs"]

    w1, b1 = packed["w1"], packed["b1"]
    w2, b2 = packed["w2"], packed["b2"]
    wh, bh = packed["wh"], packed["bh"]
    compute_dtype = w1.dtype

    K1, H1 = w1.shape
    H2 = w2.shape[1]
    OUT_PAD = wh.shape[1]

    # Pad batch to a multiple of the tile and features to K1 (zero columns
    # contribute nothing to the contraction -> results are exact).
    B_pad = _round_up(max(B, tb), tb)
    x_pad = jnp.zeros((B_pad, K1), compute_dtype)
    x_pad = x_pad.at[:B, :obs_dim].set(x.astype(compute_dtype))

    grid = (B_pad // tb,)
    itemsize = jnp.dtype(compute_dtype).itemsize

    flops = 2 * B_pad * (K1 * H1 + H1 * H2 + H2 * OUT_PAD)
    bytes_accessed = (
        B_pad * K1 * itemsize                      # x
        + (K1 * H1 + H1 * H2 + H2 * OUT_PAD) * itemsize   # weights
        + (H1 + H2 + OUT_PAD) * 4                  # biases (f32)
        + B_pad * OUT_PAD * 4                      # output slab (f32)
    )

    # Weights / biases: constant index_map -> fetched once, VMEM-resident.
    const = lambda i: (0, 0)
    in_specs = [
        pl.BlockSpec((tb, K1), lambda i: (i, 0)),   # x: tiled over batch
        pl.BlockSpec((K1, H1), const),              # w1
        pl.BlockSpec((1, H1), const),               # b1
        pl.BlockSpec((H1, H2), const),              # w2
        pl.BlockSpec((1, H2), const),               # b2
        pl.BlockSpec((H2, OUT_PAD), const),         # wh (policy|value fused)
        pl.BlockSpec((1, OUT_PAD), const),          # bh
    ]
    out_spec = pl.BlockSpec((tb, OUT_PAD), lambda i: (i, 0))

    out = pl.pallas_call(
        mlp_ppo_kernel,
        out_shape=jax.ShapeDtypeStruct((B_pad, OUT_PAD), jnp.float32),
        grid=grid,
        in_specs=in_specs,
        out_specs=out_spec,
        compiler_params=pltpu.CompilerParams(
            dimension_semantics=("parallel",),      # shards across TCs on v7x
        ),
        cost_estimate=pl.CostEstimate(
            flops=flops, transcendentals=0, bytes_accessed=bytes_accessed),
    )(x_pad, w1, b1, w2, b2, wh, bh)

    policy = out[:B, :num_outputs]
    value = out[:B, num_outputs:num_outputs + 1]   # value_function() == value.flatten()
    return policy, value


# ---------------------------------------------------------------------------
# Deterministic synthetic parameters (PyTorch Linear init, transposed layout)
# ---------------------------------------------------------------------------
def init_params(key, obs_dim, num_outputs):
    ks = jax.random.split(key, 8)

    def lin(kw, kb, fan_in, fan_out):
        bound = 1.0 / jnp.sqrt(fan_in)
        w = jax.random.uniform(kw, (fan_in, fan_out), jnp.float32, -bound, bound)
        b = jax.random.uniform(kb, (1, fan_out), jnp.float32, -bound, bound)
        return w, b

    w1, b1 = lin(ks[0], ks[1], obs_dim, 512)
    w2, b2 = lin(ks[2], ks[3], 512, 256)
    wp, bp = lin(ks[4], ks[5], 256, num_outputs)
    wv, bv = lin(ks[6], ks[7], 256, 1)
    return dict(w1=w1, b1=b1, w2=w2, b2=b2, wp=wp, bp=bp, wv=wv, bv=bv)


def reference_forward(x, p):
    h1 = jnp.maximum(x @ p["w1"] + p["b1"], 0.0)
    h2 = jnp.maximum(h1 @ p["w2"] + p["b2"], 0.0)
    return h2 @ p["wp"] + p["bp"], h2 @ p["wv"] + p["bv"]


if __name__ == "__main__":
    key = jax.random.PRNGKey(0)
    k_obs, k_par = jax.random.split(key)

    B, obs_dim, num_outputs = 8, 32, 4
    x = jax.random.normal(k_obs, (B, obs_dim), jnp.float32)
    params = init_params(k_par, obs_dim, num_outputs)

    # f32 storage here so the 1e-4 check vs. the exact torch-equivalent ref
    # holds; pass compute_dtype=jnp.bfloat16 for the v6e/v7x fast path.
    packed = pack_params(params, compute_dtype=jnp.float32)

    policy, value = jax.block_until_ready(mlp_ppo_forward(x, packed))

    ref_policy, ref_value = reference_forward(x, params)
    assert policy.shape == (B, num_outputs) and value.shape == (B, 1)
    assert jnp.allclose(policy, ref_policy, atol=1e-4, rtol=1e-4)
    assert jnp.allclose(value, ref_value, atol=1e-4, rtol=1e-4)
    # value_function() in the torch module is just value.flatten(); no extra compute.

    print("KERNEL_OK")
</pallas_src>

<mosaic_0001>
module attributes {stable_mosaic.version = 11 : i64} {
  func.func @mlp_ppo_kernel(%arg0: i32, %arg1: memref<128x128xf32, #tpu.memory_space<vmem>>, %arg2: memref<128x512xf32, #tpu.memory_space<vmem>>, %arg3: memref<1x512xf32, #tpu.memory_space<vmem>>, %arg4: memref<512x256xf32, #tpu.memory_space<vmem>>, %arg5: memref<1x256xf32, #tpu.memory_space<vmem>>, %arg6: memref<256x128xf32, #tpu.memory_space<vmem>>, %arg7: memref<1x128xf32, #tpu.memory_space<vmem>>, %arg8: memref<128x128xf32, #tpu.memory_space<vmem>>) attributes {dimension_semantics = [#tpu.dimension_semantics<parallel>], iteration_bounds = array<i64: 1>, scalar_prefetch = 0 : i64, scratch_operands = 0 : i64, tpu.core_type = #tpu.core_type<tc>, window_params = [{transform_indices = @transform_0, window_bounds = array<i64: 128, 128>}, {pipeline_mode = #tpu.pipeline_mode<synchronous>, transform_indices = @transform_1, window_bounds = array<i64: 128, 512>}, {pipeline_mode = #tpu.pipeline_mode<synchronous>, transform_indices = @transform_2, window_bounds = array<i64: 1, 512>}, {pipeline_mode = #tpu.pipeline_mode<synchronous>, transform_indices = @transform_3, window_bounds = array<i64: 512, 256>}, {pipeline_mode = #tpu.pipeline_mode<synchronous>, transform_indices = @transform_4, window_bounds = array<i64: 1, 256>}, {pipeline_mode = #tpu.pipeline_mode<synchronous>, transform_indices = @transform_5, window_bounds = array<i64: 256, 128>}, {pipeline_mode = #tpu.pipeline_mode<synchronous>, transform_indices = @transform_6, window_bounds = array<i64: 1, 128>}, {transform_indices = @transform_7, window_bounds = array<i64: 128, 128>}]} {
    %c0 = arith.constant 0 : index
    %c0_0 = arith.constant 0 : index
    %0 = vector.load %arg1[%c0, %c0_0] : memref<128x128xf32, #tpu.memory_space<vmem>>, vector<128x128xf32>
    %c0_1 = arith.constant 0 : index
    %c0_2 = arith.constant 0 : index
    %1 = vector.load %arg2[%c0_1, %c0_2] : memref<128x512xf32, #tpu.memory_space<vmem>>, vector<128x512xf32>
    %cst = arith.constant dense<0.000000e+00> : vector<128x512xf32>
    %2 = tpu.matmul %0, %1, %cst {dimension_numbers = #tpu.dot_dimension_numbers<[1], [0], [0], [1], [0, 0, 1, 1], [], []>} : vector<128x128xf32>, vector<128x512xf32>, vector<128x512xf32> -> vector<128x512xf32>
    %c0_3 = arith.constant 0 : index
    %c0_4 = arith.constant 0 : index
    %3 = vector.load %arg3[%c0_3, %c0_4] : memref<1x512xf32, #tpu.memory_space<vmem>>, vector<1x512xf32>
    %4 = vector.broadcast %3 : vector<1x512xf32> to vector<128x512xf32>
    %5 = arith.addf %2, %4 : vector<128x512xf32>
    %cst_5 = arith.constant 0.000000e+00 : f32
    %6 = vector.broadcast %cst_5 : f32 to vector<128x512xf32>
    %7 = arith.maximumf %5, %6 : vector<128x512xf32>
    %c0_6 = arith.constant 0 : index
    %c0_7 = arith.constant 0 : index
    %8 = vector.load %arg4[%c0_6, %c0_7] : memref<512x256xf32, #tpu.memory_space<vmem>>, vector<512x256xf32>
    %cst_8 = arith.constant dense<0.000000e+00> : vector<128x256xf32>
    %9 = tpu.matmul %7, %8, %cst_8 {dimension_numbers = #tpu.dot_dimension_numbers<[1], [0], [0], [1], [0, 0, 1, 1], [], []>} : vector<128x512xf32>, vector<512x256xf32>, vector<128x256xf32> -> vector<128x256xf32>
    %c0_9 = arith.constant 0 : index
    %c0_10 = arith.constant 0 : index
    %10 = vector.load %arg5[%c0_9, %c0_10] : memref<1x256xf32, #tpu.memory_space<vmem>>, vector<1x256xf32>
    %11 = vector.broadcast %10 : vector<1x256xf32> to vector<128x256xf32>
    %12 = arith.addf %9, %11 : vector<128x256xf32>
    %cst_11 = arith.constant 0.000000e+00 : f32
    %13 = vector.broadcast %cst_11 : f32 to vector<128x256xf32>
    %14 = arith.maximumf %12, %13 : vector<128x256xf32>
    %c0_12 = arith.constant 0 : index
    %c0_13 = arith.constant 0 : index
    %15 = vector.load %arg6[%c0_12, %c0_13] : memref<256x128xf32, #tpu.memory_space<vmem>>, vector<256x128xf32>
    %cst_14 = arith.constant dense<0.000000e+00> : vector<128x128xf32>
    %16 = tpu.matmul %14, %15, %cst_14 {dimension_numbers = #tpu.dot_dimension_numbers<[1], [0], [0], [1], [0, 0, 1, 1], [], []>} : vector<128x256xf32>, vector<256x128xf32>, vector<128x128xf32> -> vector<128x128xf32>
    %c0_15 = arith.constant 0 : index
    %c0_16 = arith.constant 0 : index
    %17 = vector.load %arg7[%c0_15, %c0_16] : memref<1x128xf32, #tpu.memory_space<vmem>>, vector<1x128xf32>
    %18 = vector.broadcast %17 : vector<1x128xf32> to vector<128x128xf32>
    %19 = arith.addf %16, %18 : vector<128x128xf32>
    %c0_17 = arith.constant 0 : index
    %c0_18 = arith.constant 0 : index
    %20 = vector.load %arg8[%c0_17, %c0_18] : memref<128x128xf32, #tpu.memory_space<vmem>>, vector<128x128xf32>
    tpu.vector_store %arg8[%c0_17, %c0_18], %19 {strides = array<i32>} : memref<128x128xf32, #tpu.memory_space<vmem>>, vector<128x128xf32>,
    return
  }
  func.func @transform_0(%arg0: i32) -> (i32, i32) {
    %c0_i32 = arith.constant 0 : i32
    %c0_i32_0 = arith.constant 0 : i32
    return %arg0, %c0_i32 : i32, i32
  }
  func.func @transform_1(%arg0: i32) -> (i32, i32) {
    %c0_i32 = arith.constant 0 : i32
    %c0_i32_0 = arith.constant 0 : i32
    %c0_i32_1 = arith.constant 0 : i32
    return %c0_i32, %c0_i32_0 : i32, i32
  }
  func.func @transform_2(%arg0: i32) -> (i32, i32) {
    %c0_i32 = arith.constant 0 : i32
    %c0_i32_0 = arith.constant 0 : i32
    %c0_i32_1 = arith.constant 0 : i32
    return %c0_i32, %c0_i32_0 : i32, i32
  }
  func.func @transform_3(%arg0: i32) -> (i32, i32) {
    %c0_i32 = arith.constant 0 : i32
    %c0_i32_0 = arith.constant 0 : i32
    %c0_i32_1 = arith.constant 0 : i32
    return %c0_i32, %c0_i32_0 : i32, i32
  }
  func.func @transform_4(%arg0: i32) -> (i32, i32) {
    %c0_i32 = arith.constant 0 : i32
    %c0_i32_0 = arith.constant 0 : i32
    %c0_i32_1 = arith.constant 0 : i32
    return %c0_i32, %c0_i32_0 : i32, i32
  }
  func.func @transform_5(%arg0: i32) -> (i32, i32) {
    %c0_i32 = arith.constant 0 : i32
    %c0_i32_0 = arith.constant 0 : i32
    %c0_i32_1 = arith.constant 0 : i32
    return %c0_i32, %c0_i32_0 : i32, i32
  }
  func.func @transform_6(%arg0: i32) -> (i32, i32) {
    %c0_i32 = arith.constant 0 : i32
    %c0_i32_0 = arith.constant 0 : i32
    %c0_i32_1 = arith.constant 0 : i32
    return %c0_i32, %c0_i32_0 : i32, i32
  }
  func.func @transform_7(%arg0: i32) -> (i32, i32) {
    %c0_i32 = arith.constant 0 : i32
    %c0_i32_0 = arith.constant 0 : i32
    return %arg0, %c0_i32 : i32, i32
  }
}

</mosaic_0001>

<bundles_post_ra>
// kernel: tpu_custom_call.1
= control target key start
LH: loop header
LB: loop body
LE: loop exit
PB: predicated region body
PF: predicated region fallthrough
CT: control target
= control target key end

     0   :  { %12 = vsyncpa [#allocation3], 0  ;;  %s2635_s0 = inlined_call_operand.hbm [shape: f32[128,128], index: 0, kind: input, shape index: {}]   ;;  %s2636_s1 = inlined_call_operand.hbm [shape: f32[128,512], index: 1, kind: input, shape index: {}]   ;;  %s2637_s2 = inlined_call_operand.hbm [shape: f32[1,512], index: 2, kind: input, shape index: {}]   ;;  %s2638_s3 = inlined_call_operand.hbm [shape: f32[512,256], index: 3, kind: input, shape index: {}]   ;;  %s2639_s4 = inlined_call_operand.vmem [shape: f32[1,256], index: 4, kind: input, shape index: {}]   ;;  %s2640_s5 = inlined_call_operand.hbm [shape: f32[256,128], index: 5, kind: input, shape index: {}]   ;;  %s2641_s6 = inlined_call_operand.vmem [shape: f32[1,128], index: 6, kind: input, shape index: {}]   ;;  %s2642_s7 = inlined_call_operand.hbm [shape: f32[128,128], index: 7, kind: output, shape index: {}]  }
   0x1   :  { %13 = vsyncpa [#allocation6], 0 }
   0x2   :  { %14 = vsyncpa [#allocation9], 0  ;;  %s33_s26 = sshll.u32 %s2636_s1, 4  ;;  %s34_s26 = int_to_ptr.hbm [resolvable:$true] %s33_s26 }
   0x3   :  { %15 = vsyncpa [#allocation4], 0  ;;  %s1603_s27 = smov [#allocation5]   ;;  %s57_s8 = sshll.u32 %s2638_s3, 4  ;;  %s58_s8 = int_to_ptr.hbm [resolvable:$true] %s57_s8 }
   0x4   :  { %s35_s28 = sshll.u32 %s1603_s27, 4  ;;  %s1604_s9 = smov 512   ;;  %s36_s28 = int_to_ptr.vmem [resolvable:$true] %s35_s28 }
   0x5   :  { %s1605_s10 = smov 32   ;;  %s1606_s11 = smov [#allocation8]  }
   0x6   :  { %41 = dma.hbm_to_vmem [thread:$0]  %s34_s26, 8192, %s36_s28, [#allocation6], %s1604_s9, %s1604_s9, %s1605_s10  }
   0x7   :  { %s59_s12 = sshll.u32 %s1606_s11, 4  ;;  %s1607_s13 = smov 256   ;;  %s60_s12 = int_to_ptr.vmem [resolvable:$true] %s59_s12 }
   0x8   :  { %s1608_s14 = smov 16   ;;  %s20_s16 = sshll.u32 %s2635_s0, 4  ;;  %s21_s16 = int_to_ptr.hbm [resolvable:$true] %s20_s16 }
   0x9   :  { %65 = dma.hbm_to_vmem [thread:$0]  %s58_s8, 16384, %s60_s12, [#allocation9], %s1607_s13, %s1607_s13, %s1608_s14  }
   0xa   :  { %s1609_s17 = smov [#allocation2]   ;;  %s47_s20 = sshll.u32 %s2637_s2, 4  ;;  %s48_s20 = int_to_ptr.hbm [resolvable:$true] %s47_s20 }
   0xb   :  { %s22_s18 = sshll.u32 %s1609_s17, 4  ;;  %s1610_s21 = smov 128   ;;  %s23_s18 = int_to_ptr.vmem [resolvable:$true] %s22_s18 }
   0xc   :  { %s1611_s22 = smov 8   ;;  %s1612_s23 = smov [#allocation7]  }
   0xd   :  { %28 = dma.hbm_to_vmem [thread:$0]  %s21_s16, 2048, %s23_s18, [#allocation3], %s1610_s21, %s1610_s21, %s1611_s22  }
   0xe   :  { %s49_s24 = sshll.u32 %s1612_s23, 4  ;;  %s72_s0 = sshll.u32 %s2640_s5, 4  ;;  %s50_s24 = int_to_ptr.vmem [resolvable:$true] %s49_s24  ;;  %s73_s0 = int_to_ptr.hbm [resolvable:$true] %s72_s0 }
   0xf   :  { %52 = dma.hbm_to_vmem [thread:$0]  %s48_s20, 64, %s50_s24, [#allocation6]  }
  0x10   :  { %s1613_s27 = smov [#allocation10]  }
  0x11   :  { %s74_s28 = sshll.u32 %s1613_s27, 4  ;;  %s75_s28 = int_to_ptr.vmem [resolvable:$true] %s74_s28 }
  0x12   :  { %80 = dma.hbm_to_vmem [thread:$0]  %s73_s0, 4096, %s75_s28, [#allocation9], %s1610_s21, %s1610_s21, %s1611_s22  }
  0x13   :  { %1595 = dma.done.wait [#allocation3], 2048  }
  0x14   :  { %1596 = vsyncadd [#allocation3], 4294965248 }
  0x15   :  { %1597 = dma.done.wait [#allocation6], 8256  }
  0x16   :  { %1598 = vsyncadd [#allocation6], 4294959040 }
  0x17   :  { %1599 = dma.done.wait [#allocation9], 20480  }
  0x18   :  { %1600 = vsyncadd [#allocation9], 4294946816  ;;  %v179_v0 = vld [vmem:[#allocation5 + $0x1e0] sm:$0xff]  ;;  %v180_v1 = vld [vmem:[#allocation5 + $0x1e8] sm:$0xff]  ;;  %s1391_s10 = sshll.u32 %s2642_s7, 4  ;;  %s1392_s10 = int_to_ptr.hbm [resolvable:$true] %s1391_s10 }
  0x19   :  { %v175_v2 = vld [vmem:[#allocation5 + $0x1c0] sm:$0xff]  ;;  %193 = vmatpush.msra.mxu0 %v179_v0  ;;  %1406 = vmatpush.msra.mxu2 %v179_v0  ;;  %v176_v3 = vld [vmem:[#allocation5 + $0x1c8] sm:$0xff]  ;;  %v181_v34 = vld [vmem:[#allocation5 + $0x1f0] sm:$0xff] }
  0x1a   :  { %258 = vmatpush.msra.mxu1 %v180_v1  ;;  %1422 = vmatpush.msra.mxu3 %v180_v1  ;;  %v171_v4 = vld [vmem:[#allocation5 + $0x1a0] sm:$0xff]  ;;  %v172_v5 = vld [vmem:[#allocation5 + $0x1a8] sm:$0xff]  ;;  %v182_v35 = vld [vmem:[#allocation5 + $0x1f8] sm:$0xff] }
  0x1b   :  { %194 = vmatpush.msra.mxu0 %v175_v2  ;;  %1407 = vmatpush.msra.mxu2 %v175_v2  ;;  %v167_v6 = vld [vmem:[#allocation5 + $0x180] sm:$0xff]  ;;  %v168_v7 = vld [vmem:[#allocation5 + $0x188] sm:$0xff]  ;;  %v177_v36 = vld [vmem:[#allocation5 + $0x1d0] sm:$0xff] }
  0x1c   :  { %259 = vmatpush.msra.mxu1 %v176_v3  ;;  %1423 = vmatpush.msra.mxu3 %v176_v3  ;;  %v163_v8 = vld [vmem:[#allocation5 + $0x160] sm:$0xff]  ;;  %v164_v9 = vld [vmem:[#allocation5 + $0x168] sm:$0xff]  ;;  %v178_v37 = vld [vmem:[#allocation5 + $0x1d8] sm:$0xff] }
  0x1d   :  { %195 = vmatpush.msra.mxu0 %v171_v4  ;;  %1408 = vmatpush.msra.mxu2 %v171_v4  ;;  %v159_v10 = vld [vmem:[#allocation5 + $0x140] sm:$0xff]  ;;  %v160_v11 = vld [vmem:[#allocation5 + $0x148] sm:$0xff]  ;;  %v173_v38 = vld [vmem:[#allocation5 + $0x1b0] sm:$0xff] }
  0x1e   :  { %260 = vmatpush.msra.mxu1 %v172_v5  ;;  %1424 = vmatpush.msra.mxu3 %v172_v5  ;;  %v155_v12 = vld [vmem:[#allocation5 + $0x120] sm:$0xff]  ;;  %v156_v13 = vld [vmem:[#allocation5 + $0x128] sm:$0xff]  ;;  %v174_v39 = vld [vmem:[#allocation5 + $0x1b8] sm:$0xff] }
  0x1f   :  { %196 = vmatpush.msra.mxu0 %v167_v6  ;;  %1409 = vmatpush.msra.mxu2 %v167_v6  ;;  %v151_v14 = vld [vmem:[#allocation5 + $0x100] sm:$0xff]  ;;  %v152_v15 = vld [vmem:[#allocation5 + $0x108] sm:$0xff]  ;;  %v169_v42 = vld [vmem:[#allocation5 + $0x190] sm:$0xff] }
  0x20   :  { %261 = vmatpush.msra.mxu1 %v168_v7  ;;  %1425 = vmatpush.msra.mxu3 %v168_v7  ;;  %v147_v16 = vld [vmem:[#allocation5 + $0xe0] sm:$0xff]  ;;  %v148_v17 = vld [vmem:[#allocation5 + $0xe8] sm:$0xff]  ;;  %v170_v43 = vld [vmem:[#allocation5 + $0x198] sm:$0xff] }
  0x21   :  { %197 = vmatpush.msra.mxu0 %v163_v8  ;;  %1410 = vmatpush.msra.mxu2 %v163_v8  ;;  %v143_v18 = vld [vmem:[#allocation5 + $0xc0] sm:$0xff]  ;;  %v144_v19 = vld [vmem:[#allocation5 + $0xc8] sm:$0xff]  ;;  %v165_v44 = vld [vmem:[#allocation5 + $0x170] sm:$0xff] }
  0x22   :  { %262 = vmatpush.msra.mxu1 %v164_v9  ;;  %1426 = vmatpush.msra.mxu3 %v164_v9  ;;  %v139_v20 = vld [vmem:[#allocation5 + $0xa0] sm:$0xff]  ;;  %v140_v21 = vld [vmem:[#allocation5 + $0xa8] sm:$0xff]  ;;  %v166_v45 = vld [vmem:[#allocation5 + $0x178] sm:$0xff] }
  0x23   :  { %198 = vmatpush.msra.mxu0 %v159_v10  ;;  %1411 = vmatpush.msra.mxu2 %v159_v10  ;;  %v135_v22 = vld [vmem:[#allocation5 + $0x80] sm:$0xff]  ;;  %v136_v23 = vld [vmem:[#allocation5 + $0x88] sm:$0xff]  ;;  %v161_v46 = vld [vmem:[#allocation5 + $0x150] sm:$0xff] }
  0x24   :  { %263 = vmatpush.msra.mxu1 %v160_v11  ;;  %1427 = vmatpush.msra.mxu3 %v160_v11  ;;  %v131_v24 = vld [vmem:[#allocation5 + $0x60] sm:$0xff]  ;;  %v132_v25 = vld [vmem:[#allocation5 + $0x68] sm:$0xff]  ;;  %v162_v47 = vld [vmem:[#allocation5 + $0x158] sm:$0xff] }
  0x25   :  { %199 = vmatpush.msra.mxu0 %v155_v12  ;;  %1412 = vmatpush.msra.mxu2 %v155_v12  ;;  %v127_v26 = vld [vmem:[#allocation5 + $0x40] sm:$0xff]  ;;  %v128_v27 = vld [vmem:[#allocation5 + $0x48] sm:$0xff]  ;;  %v1692_v48 = vld [vmem:[#allocation2 + $0x10] sm:$0xff] }
  0x26   :  { %264 = vmatpush.msra.mxu1 %v156_v13  ;;  %1428 = vmatpush.msra.mxu3 %v156_v13  ;;  %v123_v28 = vld [vmem:[#allocation5 + $0x20] sm:$0xff]  ;;  %v124_v29 = vld [vmem:[#allocation5 + $0x28] sm:$0xff]  ;;  %v1694_v49 = vld [vmem:[#allocation2 + $0x50] sm:$0xff] }
  0x27   :  { %200 = vmatpush.msra.mxu0 %v151_v14  ;;  %1413 = vmatpush.msra.mxu2 %v151_v14  ;;  %v119_v30 = vld [vmem:[#allocation5] sm:$0xff]  ;;  %v120_v31 = vld [vmem:[#allocation5 + $0x8] sm:$0xff]  ;;  %v157_v50 = vld [vmem:[#allocation5 + $0x130] sm:$0xff] }
  0x28   :  { %265 = vmatpush.msra.mxu1 %v152_v15  ;;  %1429 = vmatpush.msra.mxu3 %v152_v15  ;;  %v1676_v32 = vld [vmem:[#allocation2] sm:$0xff]  ;;  %v1684_v40 = vld [vmem:[#allocation2 + $0x8] sm:$0xff]  ;;  %v158_v51 = vld [vmem:[#allocation5 + $0x138] sm:$0xff] }
  0x29   :  { %201 = vmatpush.msra.mxu0 %v147_v16  ;;  %1414 = vmatpush.msra.mxu2 %v147_v16  ;;  %v1678_v33 = vld [vmem:[#allocation2 + $0x40] sm:$0xff]  ;;  %v1686_v41 = vld [vmem:[#allocation2 + $0x48] sm:$0xff]  ;;  %v153_v52 = vld [vmem:[#allocation5 + $0x110] sm:$0xff] }
  0x2a   :  { %266 = vmatpush.msra.mxu1 %v148_v17  ;;  %1430 = vmatpush.msra.mxu3 %v148_v17  ;;  %v154_v53 = vld [vmem:[#allocation5 + $0x118] sm:$0xff]  ;;  %v149_v54 = vld [vmem:[#allocation5 + $0xf0] sm:$0xff]  ;;  %v1708_v0 = vld [vmem:[#allocation2 + $0x20] sm:$0xff] }
  0x2b   :  { %202 = vmatpush.msra.mxu0 %v143_v18  ;;  %1415 = vmatpush.msra.mxu2 %v143_v18  ;;  %v150_v55 = vld [vmem:[#allocation5 + $0xf8] sm:$0xff]  ;;  %v145_v58 = vld [vmem:[#allocation5 + $0xd0] sm:$0xff]  ;;  %v1710_v1 = vld [vmem:[#allocation2 + $0x60] sm:$0xff] }
  0x2c   :  { %267 = vmatpush.msra.mxu1 %v144_v19  ;;  %1431 = vmatpush.msra.mxu3 %v144_v19  ;;  %v1700_v56 = vld [vmem:[#allocation2 + $0x18] sm:$0xff]  ;;  %v141_v60 = vld [vmem:[#allocation5 + $0xb0] sm:$0xff]  ;;  %v1716_v8 = vld [vmem:[#allocation2 + $0x28] sm:$0xff] }
  0x2d   :  { %203 = vmatpush.msra.mxu0 %v139_v20  ;;  %1416 = vmatpush.msra.mxu2 %v139_v20  ;;  %v1702_v57 = vld [vmem:[#allocation2 + $0x58] sm:$0xff]  ;;  %v137_v62 = vld [vmem:[#allocation5 + $0x90] sm:$0xff]  ;;  %v1718_v9 = vld [vmem:[#allocation2 + $0x68] sm:$0xff] }
  0x2e   :  { %268 = vmatpush.msra.mxu1 %v140_v21  ;;  %1432 = vmatpush.msra.mxu3 %v140_v21  ;;  %v146_v59 = vld [vmem:[#allocation5 + $0xd8] sm:$0xff]  ;;  %v133_v2 = vld [vmem:[#allocation5 + $0x70] sm:$0xff]  ;;  %v609_v16 = vld [vmem:[#allocation8 + $0x2e0] sm:$0xff] }
  0x2f   :  { %204 = vmatpush.msra.mxu0 %v135_v22  ;;  %1417 = vmatpush.msra.mxu2 %v135_v22  ;;  %v142_v61 = vld [vmem:[#allocation5 + $0xb8] sm:$0xff]  ;;  %v129_v4 = vld [vmem:[#allocation5 + $0x50] sm:$0xff]  ;;  %v641_v17 = vld [vmem:[#allocation8 + $0x3e0] sm:$0xff] }
  0x30   :  { %269 = vmatpush.msra.mxu1 %v136_v23  ;;  %1433 = vmatpush.msra.mxu3 %v136_v23  ;;  %v138_v63 = vld [vmem:[#allocation5 + $0x98] sm:$0xff]  ;;  %v125_v6 = vld [vmem:[#allocation5 + $0x30] sm:$0xff]  ;;  %v605_v22 = vld [vmem:[#allocation8 + $0x2c0] sm:$0xff] }
  0x31   :  { %205 = vmatpush.msra.mxu0 %v131_v24  ;;  %1418 = vmatpush.msra.mxu2 %v131_v24  ;;  %v134_v3 = vld [vmem:[#allocation5 + $0x78] sm:$0xff]  ;;  %v121_v10 = vld [vmem:[#allocation5 + $0x10] sm:$0xff]  ;;  %v637_v23 = vld [vmem:[#allocation8 + $0x3c0] sm:$0xff] }
  0x32   :  { %270 = vmatpush.msra.mxu1 %v132_v25  ;;  %1434 = vmatpush.msra.mxu3 %v132_v25  ;;  %v130_v5 = vld [vmem:[#allocation5 + $0x58] sm:$0xff]  ;;  %v1724_v14 = vld [vmem:[#allocation2 + $0x30] sm:$0xff] }
  0x33   :  { %206 = vmatpush.msra.mxu0 %v127_v26  ;;  %1419 = vmatpush.msra.mxu2 %v127_v26  ;;  %v126_v7 = vld [vmem:[#allocation5 + $0x38] sm:$0xff]  ;;  %v1726_v15 = vld [vmem:[#allocation2 + $0x70] sm:$0xff]  ;;  %v545_v26 = vld [vmem:[#allocation8 + $0xe0] sm:$0xff] }
  0x34   :  { %271 = vmatpush.msra.mxu1 %v128_v27  ;;  %1435 = vmatpush.msra.mxu3 %v128_v27  ;;  %v122_v11 = vld [vmem:[#allocation5 + $0x18] sm:$0xff]  ;;  %v577_v27 = vld [vmem:[#allocation8 + $0x1e0] sm:$0xff] }
  0x35   :  { %207 = vmatpush.msra.mxu0 %v123_v28  ;;  %1420 = vmatpush.msra.mxu2 %v123_v28  ;;  %v611_v12 = vld [vmem:[#allocation8 + $0x2f0] sm:$0xff] }
  0x36   :  { %272 = vmatpush.msra.mxu1 %v124_v29  ;;  %1436 = vmatpush.msra.mxu3 %v124_v29  ;;  %v643_v13 = vld [vmem:[#allocation8 + $0x3f0] sm:$0xff] }
  0x37   :  { %208 = vmatpush.msra.mxu0 %v119_v30  ;;  %1421 = vmatpush.msra.mxu2 %v119_v30  ;;  %v1732_v18 = vld [vmem:[#allocation2 + $0x38] sm:$0xff] }
  0x38   :  { %273 = vmatpush.msra.mxu1 %v120_v31  ;;  %1437 = vmatpush.msra.mxu3 %v120_v31  ;;  %v1734_v19 = vld [vmem:[#allocation2 + $0x78] sm:$0xff]  ;;  %v541_v31 = vld [vmem:[#allocation8 + $0xc0] sm:$0xff] }
  0x39   :  { %209 = vmatmul.f32.vlgmr.msra.gmra.mxu0 %v1676_v32  ;;  %233 = vmatmul.f32.vlgmr.msra.gmra.mxu2 %v1678_v33  ;;  %v607_v20 = vld [vmem:[#allocation8 + $0x2d0] sm:$0xff] }
  0x3a   :  { %274 = vmatmul.f32.vlgmr.msra.gmra.mxu1 %v1676_v32  ;;  %298 = vmatmul.f32.vlgmr.msra.gmra.mxu3 %v1678_v33  ;;  %v639_v21 = vld [vmem:[#allocation8 + $0x3d0] sm:$0xff] }
  0x3b   :  { %323 = vmatpush.msrb.mxu2 %v181_v34  ;;  %388 = vmatpush.msrb.mxu3 %v182_v35  ;;  %v547_v24 = vld [vmem:[#allocation8 + $0xf0] sm:$0xff] }
  0x3c   :  { %v579_v25 = vld [vmem:[#allocation8 + $0x1f0] sm:$0xff]  ;;  %651 = vmatpush.msrb.mxu0 %v547_v24 }
  0x3d   :  { %324 = vmatpush.msrb.mxu2 %v177_v36  ;;  %389 = vmatpush.msrb.mxu3 %v178_v37  ;;  %v543_v28 = vld [vmem:[#allocation8 + $0xd0] sm:$0xff]  ;;  %v537_v37 = vld [vmem:[#allocation8 + $0xa0] sm:$0xff] }
  0x3e   :  { %716 = vmatpush.msrb.mxu1 %v579_v25  ;;  %v575_v29 = vld [vmem:[#allocation8 + $0x1d0] sm:$0xff]  ;;  %652 = vmatpush.msrb.mxu0 %v545_v26  ;;  %v621_v25 = vld [vmem:[#allocation8 + $0x340] sm:$0xff] }
  0x3f   :  { %325 = vmatpush.msrb.mxu2 %v173_v38  ;;  %390 = vmatpush.msrb.mxu3 %v174_v39  ;;  %v603_v30 = vld [vmem:[#allocation8 + $0x2b0] sm:$0xff]  ;;  %v569_v38 = vld [vmem:[#allocation8 + $0x1a0] sm:$0xff] }
  0x40   :  { %717 = vmatpush.msrb.mxu1 %v577_v27  ;;  %653 = vmatpush.msrb.mxu0 %v543_v28  ;;  %v635_v34 = vld [vmem:[#allocation8 + $0x3b0] sm:$0xff] }
  0x41   :  { %212 = vmatmul.f32.gmra.mxu0 %v1684_v40  ;;  %236 = vmatmul.f32.gmra.mxu2 %v1686_v41  ;;  %v539_v35 = vld [vmem:[#allocation8 + $0xb0] sm:$0xff] }
  0x42   :  { %277 = vmatmul.f32.gmra.mxu1 %v1684_v40  ;;  %301 = vmatmul.f32.gmra.mxu3 %v1686_v41  ;;  %v571_v36 = vld [vmem:[#allocation8 + $0x1b0] sm:$0xff] }
  0x43   :  { %326 = vmatpush.msrb.mxu2 %v169_v42  ;;  %391 = vmatpush.msrb.mxu3 %v170_v43  ;;  %v535_v39 = vld [vmem:[#allocation8 + $0x90] sm:$0xff]  ;;  %v533_v43 = vld [vmem:[#allocation8 + $0x80] sm:$0xff] }
  0x44   :  { %718 = vmatpush.msrb.mxu1 %v575_v29  ;;  %654 = vmatpush.msrb.mxu0 %v541_v31  ;;  %v567_v42 = vld [vmem:[#allocation8 + $0x190] sm:$0xff] }
  0x45   :  { %327 = vmatpush.msrb.mxu2 %v165_v44  ;;  %392 = vmatpush.msrb.mxu3 %v166_v45  ;;  %v565_v44 = vld [vmem:[#allocation8 + $0x180] sm:$0xff] }
  0x46   :  { %655 = vmatpush.msrb.mxu0 %v539_v35  ;;  %v633_v45 = vld [vmem:[#allocation8 + $0x3a0] sm:$0xff]  ;;  %v619_v35 = vld [vmem:[#allocation8 + $0x330] sm:$0xff] }
  0x47   :  { %328 = vmatpush.msrb.mxu2 %v161_v46  ;;  %393 = vmatpush.msrb.mxu3 %v162_v47  ;;  %v531_v46 = vld [vmem:[#allocation8 + $0x70] sm:$0xff] }
  0x48   :  { %656 = vmatpush.msrb.mxu0 %v537_v37  ;;  %v563_v47 = vld [vmem:[#allocation8 + $0x170] sm:$0xff] }
  0x49   :  { %215 = vmatmul.f32.gmra.mxu0 %v1692_v48  ;;  %239 = vmatmul.f32.gmra.mxu2 %v1694_v49 }
  0x4a   :  { %280 = vmatmul.f32.gmra.mxu1 %v1692_v48  ;;  %304 = vmatmul.f32.gmra.mxu3 %v1694_v49 }
  0x4b   :  { %329 = vmatpush.msrb.mxu2 %v157_v50  ;;  %394 = vmatpush.msrb.mxu3 %v158_v51  ;;  %v529_v50 = vld [vmem:[#allocation8 + $0x60] sm:$0xff] }
  0x4c   :  { %657 = vmatpush.msrb.mxu0 %v535_v39  ;;  %v561_v51 = vld [vmem:[#allocation8 + $0x160] sm:$0xff] }
  0x4d   :  { %330 = vmatpush.msrb.mxu2 %v153_v52  ;;  %395 = vmatpush.msrb.mxu3 %v154_v53  ;;  %v527_v52 = vld [vmem:[#allocation8 + $0x50] sm:$0xff] }
  0x4e   :  { %658 = vmatpush.msrb.mxu0 %v533_v43  ;;  %v559_v53 = vld [vmem:[#allocation8 + $0x150] sm:$0xff]  ;;  %v585_v43 = vld [vmem:[#allocation8 + $0x220] sm:$0xff] }
  0x4f   :  { %331 = vmatpush.msrb.mxu2 %v149_v54  ;;  %396 = vmatpush.msrb.mxu3 %v150_v55  ;;  %v525_v54 = vld [vmem:[#allocation8 + $0x40] sm:$0xff] }
  0x50   :  { %659 = vmatpush.msrb.mxu0 %v531_v46  ;;  %v557_v55 = vld [vmem:[#allocation8 + $0x140] sm:$0xff] }
  0x51   :  { %218 = vmatmul.f32.gmra.mxu0 %v1700_v56  ;;  %242 = vmatmul.f32.gmra.mxu2 %v1702_v57 }
  0x52   :  { %283 = vmatmul.f32.gmra.mxu1 %v1700_v56  ;;  %307 = vmatmul.f32.gmra.mxu3 %v1702_v57 }
  0x53   :  { %332 = vmatpush.msrb.mxu2 %v145_v58  ;;  %397 = vmatpush.msrb.mxu3 %v146_v59  ;;  %v631_v58 = vld [vmem:[#allocation8 + $0x390] sm:$0xff] }
  0x54   :  { %660 = vmatpush.msrb.mxu0 %v529_v50  ;;  %v523_v59 = vld [vmem:[#allocation8 + $0x30] sm:$0xff] }
  0x55   :  { %333 = vmatpush.msrb.mxu2 %v141_v60  ;;  %398 = vmatpush.msrb.mxu3 %v142_v61  ;;  %v555_v60 = vld [vmem:[#allocation8 + $0x130] sm:$0xff]  ;;  %v521_v61 = vld [vmem:[#allocation8 + $0x20] sm:$0xff] }
  0x56   :  { %661 = vmatpush.msrb.mxu0 %v527_v52 }
  0x57   :  { %334 = vmatpush.msrb.mxu2 %v137_v62  ;;  %399 = vmatpush.msrb.mxu3 %v138_v63  ;;  %v553_v62 = vld [vmem:[#allocation8 + $0x120] sm:$0xff]  ;;  %v519_v63 = vld [vmem:[#allocation8 + $0x10] sm:$0xff] }
  0x58   :  { %662 = vmatpush.msrb.mxu0 %v525_v54 }
  0x59   :  { %221 = vmatmul.f32.gmra.mxu0 %v1708_v0  ;;  %245 = vmatmul.f32.gmra.mxu2 %v1710_v1 }
  0x5a   :  { %286 = vmatmul.f32.gmra.mxu1 %v1708_v0  ;;  %310 = vmatmul.f32.gmra.mxu3 %v1710_v1 }
  0x5b   :  { %335 = vmatpush.msrb.mxu2 %v133_v2  ;;  %400 = vmatpush.msrb.mxu3 %v134_v3  ;;  %v551_v2 = vld [vmem:[#allocation8 + $0x110] sm:$0xff]  ;;  %v517_v3 = vld [vmem:[#allocation8] sm:$0xff] }
  0x5c   :  { %663 = vmatpush.msrb.mxu0 %v523_v59 }
  0x5d   :  { %336 = vmatpush.msrb.mxu2 %v129_v4  ;;  %401 = vmatpush.msrb.mxu3 %v130_v5  ;;  %v549_v4 = vld [vmem:[#allocation8 + $0x100] sm:$0xff] }
  0x5e   :  { %664 = vmatpush.msrb.mxu0 %v521_v61  ;;  %v629_v5 = vld [vmem:[#allocation8 + $0x380] sm:$0xff] }
  0x5f   :  { %337 = vmatpush.msrb.mxu2 %v125_v6  ;;  %402 = vmatpush.msrb.mxu3 %v126_v7  ;;  %v595_v6 = vld [vmem:[#allocation8 + $0x270] sm:$0xff] }
  0x60   :  { %665 = vmatpush.msrb.mxu0 %v519_v63  ;;  %v627_v7 = vld [vmem:[#allocation8 + $0x370] sm:$0xff] }
  0x61   :  { %224 = vmatmul.f32.gmra.mxu0 %v1716_v8  ;;  %248 = vmatmul.f32.gmra.mxu2 %v1718_v9 }
  0x62   :  { %289 = vmatmul.f32.gmra.mxu1 %v1716_v8  ;;  %313 = vmatmul.f32.gmra.mxu3 %v1718_v9 }
  0x63   :  { %338 = vmatpush.msrb.mxu2 %v121_v10  ;;  %403 = vmatpush.msrb.mxu3 %v122_v11  ;;  %v625_v10 = vld [vmem:[#allocation8 + $0x360] sm:$0xff]  ;;  %v1754_v11 = vld [vmem:[#allocation7] sm:$0xf] }
  0x64   :  { %666 = vmatpush.msrb.mxu0 %v517_v3  ;;  %v613_v3 = vld [vmem:[#allocation8 + $0x300] sm:$0xff] }
  0x65   :  { %781 = vmatpush.msra.mxu2 %v611_v12  ;;  %846 = vmatpush.msra.mxu3 %v643_v13  ;;  %v591_v12 = vld [vmem:[#allocation8 + $0x250] sm:$0xff]  ;;  %v1762_v13 = vperm.slane %v1754_v11, 1 }
  0x67   :  { %782 = vmatpush.msra.mxu2 %v609_v16  ;;  %847 = vmatpush.msra.mxu3 %v641_v17  ;;  %v623_v16 = vld [vmem:[#allocation8 + $0x350] sm:$0xff] }
  0x69   :  { %227 = vmatmul.f32.gmra.mxu0 %v1724_v14  ;;  %251 = vmatmul.f32.gmra.mxu2 %v1726_v15 }
  0x6a   :  { %292 = vmatmul.f32.gmra.mxu1 %v1724_v14  ;;  %316 = vmatmul.f32.gmra.mxu3 %v1726_v15 }
  0x6b   :  { %783 = vmatpush.msra.mxu2 %v607_v20  ;;  %848 = vmatpush.msra.mxu3 %v639_v21 }
  0x6d   :  { %784 = vmatpush.msra.mxu2 %v605_v22  ;;  %849 = vmatpush.msra.mxu3 %v637_v23  ;;  %v589_v23 = vld [vmem:[#allocation8 + $0x240] sm:$0xff] }
  0x6f   :  { %785 = vmatpush.msra.mxu2 %v603_v30  ;;  %850 = vmatpush.msra.mxu3 %v635_v34 }
  0x71   :  { %230 = vmatmul.f32.gmra.mxu0 %v1732_v18  ;;  %254 = vmatmul.f32.gmra.mxu2 %v1734_v19 }
  0x72   :  { %295 = vmatmul.f32.gmra.mxu1 %v1732_v18  ;;  %319 = vmatmul.f32.gmra.mxu3 %v1734_v19 }
  0x73   :  { %851 = vmatpush.msra.mxu3 %v633_v45  ;;  %v617_v45 = vld [vmem:[#allocation8 + $0x320] sm:$0xff] }
  0x75   :  { %852 = vmatpush.msra.mxu3 %v631_v58 }
  0x77   :  { %853 = vmatpush.msra.mxu3 %v629_v5 }
  0x79   :  { %339 = vmatmul.f32.vlgmr.msrb.gmra.mxu2 %v1676_v32  ;;  %854 = vmatpush.msra.mxu3 %v627_v7 }
  0x7a   :  { %404 = vmatmul.f32.vlgmr.msrb.gmra.mxu3 %v1676_v32  ;;  %v573_v32 = vld [vmem:[#allocation8 + $0x1c0] sm:$0xff] }
  0x7b   :  { %719 = vmatpush.msrb.mxu1 %v573_v32  ;;  %855 = vmatpush.msra.mxu3 %v625_v10  ;;  %v587_v32 = vld [vmem:[#allocation8 + $0x230] sm:$0xff] }
  0x7d   :  { %720 = vmatpush.msrb.mxu1 %v571_v36  ;;  %856 = vmatpush.msra.mxu3 %v623_v16 }
  0x7f   :  { %721 = vmatpush.msrb.mxu1 %v569_v38  ;;  %857 = vmatpush.msra.mxu3 %v621_v25 }
  0x81   :  { %342 = vmatmul.f32.gmra.mxu2 %v1684_v40  ;;  %722 = vmatpush.msrb.mxu1 %v567_v42 }
  0x82   :  { %407 = vmatmul.f32.gmra.mxu3 %v1684_v40  ;;  %v601_v40 = vld [vmem:[#allocation8 + $0x2a0] sm:$0xff] }
  0x83   :  { %786 = vmatpush.msra.mxu2 %v601_v40  ;;  %723 = vmatpush.msrb.mxu1 %v565_v44 }
  0x84   :  { %858 = vmatpush.msra.mxu3 %v619_v35 }
  0x85   :  { %724 = vmatpush.msrb.mxu1 %v563_v47 }
  0x86   :  { %859 = vmatpush.msra.mxu3 %v617_v45  ;;  %v546_v45 = vld [vmem:[#allocation8 + $0xe8] sm:$0xff] }
  0x87   :  { %725 = vmatpush.msrb.mxu1 %v561_v51 }
  0x89   :  { %345 = vmatmul.f32.gmra.mxu2 %v1692_v48  ;;  %726 = vmatpush.msrb.mxu1 %v559_v53 }
  0x8a   :  { %410 = vmatmul.f32.gmra.mxu3 %v1692_v48  ;;  %v599_v48 = vld [vmem:[#allocation8 + $0x290] sm:$0xff] }
  0x8b   :  { %787 = vmatpush.msra.mxu2 %v599_v48  ;;  %727 = vmatpush.msrb.mxu1 %v557_v55  ;;  %v583_v48 = vld [vmem:[#allocation8 + $0x210] sm:$0xff] }
  0x8c   :  { %v615_v55 = vld [vmem:[#allocation8 + $0x310] sm:$0xff] }
  0x8d   :  { %728 = vmatpush.msrb.mxu1 %v555_v60  ;;  %860 = vmatpush.msra.mxu3 %v615_v55  ;;  %v581_v60 = vld [vmem:[#allocation8 + $0x200] sm:$0xff] }
  0x8f   :  { %729 = vmatpush.msrb.mxu1 %v553_v62  ;;  %861 = vmatpush.msra.mxu3 %v613_v3 }
  0x91   :  { %348 = vmatmul.f32.gmra.mxu2 %v1700_v56  ;;  %730 = vmatpush.msrb.mxu1 %v551_v2 }
  0x92   :  { %413 = vmatmul.f32.gmra.mxu3 %v1700_v56  ;;  %v597_v56 = vld [vmem:[#allocation8 + $0x280] sm:$0xff] }
  0x93   :  { %788 = vmatpush.msra.mxu2 %v597_v56  ;;  %731 = vmatpush.msrb.mxu1 %v549_v4 }
  0x95   :  { %789 = vmatpush.msra.mxu2 %v595_v6 }
  0x99   :  { %351 = vmatmul.f32.gmra.mxu2 %v1708_v0 }
  0x9a   :  { %416 = vmatmul.f32.gmra.mxu3 %v1708_v0  ;;  %v593_v0 = vld [vmem:[#allocation8 + $0x260] sm:$0xff] }
  0x9b   :  { %790 = vmatpush.msra.mxu2 %v593_v0 }
  0x9d   :  { %791 = vmatpush.msra.mxu2 %v591_v12  ;;  %v612_v12 = vld [vmem:[#allocation8 + $0x2f8] sm:$0xff] }
  0x9f   :  { %792 = vmatpush.msra.mxu2 %v589_v23 }
  0xa1   :  { %354 = vmatmul.f32.gmra.mxu2 %v1716_v8 }
  0xa2   :  { %419 = vmatmul.f32.gmra.mxu3 %v1716_v8  ;;  %v1759_v8 = vperm.slane %v1754_v11, 0  ;;  %793 = vmatpush.msra.mxu2 %v587_v32  ;;  %v580_v32 = vld [vmem:[#allocation8 + $0x1f8] sm:$0xff] }
  0xa3   :  { %976 = vmatpush.msra.mxu1 %v580_v32 }
  0xa4   :  { %794 = vmatpush.msra.mxu2 %v585_v43 }
  0xa6   :  { %795 = vmatpush.msra.mxu2 %v583_v48 }
  0xa8   :  { %796 = vmatpush.msra.mxu2 %v581_v60  ;;  %v578_v60 = vld [vmem:[#allocation8 + $0x1e8] sm:$0xff] }
  0xa9   :  { %357 = vmatmul.f32.gmra.mxu2 %v1724_v14  ;;  %977 = vmatpush.msra.mxu1 %v578_v60 }
  0xaa   :  { %422 = vmatmul.f32.gmra.mxu3 %v1724_v14  ;;  %1041 = vmatpush.msrb.mxu2 %v612_v12  ;;  %v544_v12 = vld [vmem:[#allocation8 + $0xd8] sm:$0xff] }
  0xb1   :  { %360 = vmatmul.f32.gmra.mxu2 %v1732_v18 }
  0xb2   :  { %425 = vmatmul.f32.gmra.mxu3 %v1732_v18 }
  0xb6   :  { %v210_v14 = vpop.f32.mrf.mxu0 }
  0xb7   :  { %v1765_v17 = vadd.f32 %v210_v14, %v1759_v8  ;;  %v275_v20 = vpop.f32.mrf.mxu1  ;;  %v548_v14 = vld [vmem:[#allocation8 + $0xf8] sm:$0xff] }
  0xb8   :  { %v1768_v21 = vadd.f32 %v275_v20, %v1762_v13  ;;  %v644_v20 = vld [vmem:[#allocation8 + $0x3f8] sm:$0xff]  ;;  %911 = vmatpush.msra.mxu0 %v548_v14 }
  0xb9   :  { %v453_v18 = vmax.f32 %v1765_v17, 0.0  ;;  %363 = vmatmul.f32.gmra.mxu2 %v1678_v33  ;;  %1106 = vmatpush.msrb.mxu3 %v644_v20  ;;  %v640_v14 = vld [vmem:[#allocation8 + $0x3d8] sm:$0xff] }
  0xba   :  { %v454_v22 = vmax.f32 %v1768_v21, 0.0  ;;  %428 = vmatmul.f32.gmra.mxu3 %v1678_v33  ;;  %912 = vmatpush.msra.mxu0 %v546_v45 }
  0xbb   :  { %667 = vmatmul.f32.vlgmr.msrb.gmra.mxu0 %v453_v18 }
  0xbc   :  { %732 = vmatmul.f32.vlgmr.msrb.gmra.mxu1 %v454_v22  ;;  %v1778_v24 = vpop.f32.mrf.mxu2  ;;  %913 = vmatpush.msra.mxu0 %v544_v12 }
  0xbd   :  { %v1780_v26 = vpop.f32.mrf.mxu3  ;;  %v1908_v20 = vadd.f32 %v1778_v24, %v1759_v8  ;;  %v1922_v24 = vperm.slane %v1754_v11, 3 }
  0xbe   :  { %v213_v27 = vpop.f32.mrf.mxu0 }
  0xbf   :  { %v1783_v28 = vadd.f32 %v213_v27, %v1759_v8  ;;  %v278_v29 = vpop.f32.mrf.mxu1  ;;  %v2646_v32 = vmax.f32 %v1908_v20, 0.0 }
  0xc0   :  { %v1786_v33 = vadd.f32 %v278_v29, %v1762_v13 }
  0xc1   :  { %366 = vmatmul.f32.gmra.mxu2 %v1686_v41  ;;  %v457_v30 = vmax.f32 %v1783_v28, 0.0 }
  0xc2   :  { %431 = vmatmul.f32.gmra.mxu3 %v1686_v41  ;;  %v458_v31 = vmax.f32 %v1786_v33, 0.0  ;;  %v586_v33 = vld [vmem:[#allocation8 + $0x228] sm:$0xff] }
  0xc3   :  { %670 = vmatmul.f32.gmra.mxu0 %v457_v30 }
  0xc4   :  { %735 = vmatmul.f32.gmra.mxu1 %v458_v31  ;;  %v1796_v34 = vpop.f32.mrf.mxu2 }
  0xc5   :  { %v1798_v36 = vpop.f32.mrf.mxu3  ;;  %v1930_v60 = vadd.f32 %v1796_v34, %v1759_v8 }
  0xc6   :  { %v216_v37 = vpop.f32.mrf.mxu0  ;;  %v1937_v12 = vadd.f32 %v1798_v36, %v1762_v13 }
  0xc7   :  { %v1801_v38 = vadd.f32 %v216_v37, %v1759_v8  ;;  %v281_v41 = vpop.f32.mrf.mxu1  ;;  %v2648_v34 = vmax.f32 %v1930_v60, 0.0 }
  0xc8   :  { %v1804_v39 = vadd.f32 %v281_v41, %v1762_v13  ;;  %v610_v41 = vld [vmem:[#allocation8 + $0x2e8] sm:$0xff]  ;;  %v2647_v36 = vmax.f32 %v1937_v12, 0.0 }
  0xc9   :  { %369 = vmatmul.f32.gmra.mxu2 %v1694_v49  ;;  %v461_v42 = vmax.f32 %v1801_v38, 0.0 }
  0xca   :  { %434 = vmatmul.f32.gmra.mxu3 %v1694_v49  ;;  %v462_v40 = vmax.f32 %v1804_v39, 0.0  ;;  %1042 = vmatpush.msrb.mxu2 %v610_v41  ;;  %v1918_v41 = vperm.slane %v1754_v11, 2 }
  0xcb   :  { %673 = vmatmul.f32.gmra.mxu0 %v461_v42 }
  0xcc   :  { %738 = vmatmul.f32.gmra.mxu1 %v462_v40  ;;  %v1814_v44 = vpop.f32.mrf.mxu2 }
  0xcd   :  { %v1816_v46 = vpop.f32.mrf.mxu3 }
  0xce   :  { %v219_v47 = vpop.f32.mrf.mxu0 }
  0xcf   :  { %v1819_v50 = vadd.f32 %v219_v47, %v1759_v8  ;;  %v284_v49 = vpop.f32.mrf.mxu1  ;;  %v642_v47 = vld [vmem:[#allocation8 + $0x3e8] sm:$0xff] }
  0xd0   :  { %v1822_v51 = vadd.f32 %v284_v49, %v1762_v13  ;;  %1107 = vmatpush.msrb.mxu3 %v642_v47  ;;  %v606_v47 = vld [vmem:[#allocation8 + $0x2c8] sm:$0xff] }
  0xd1   :  { %372 = vmatmul.f32.gmra.mxu2 %v1702_v57  ;;  %v2680_v52 = vmax.f32 %v1819_v50, 0.0  ;;  %v2712_v39 = vmax.f32 %v1819_v50, 0.0 }
  0xd2   :  { %437 = vmatmul.f32.gmra.mxu3 %v1702_v57  ;;  %v2675_v53 = vmax.f32 %v1822_v51, 0.0 }
  0xd3   :  { %676 = vmatmul.f32.gmra.mxu0 %v2680_v52  ;;  %1108 = vmatpush.msrb.mxu3 %v640_v14 }
  0xd4   :  { %741 = vmatmul.f32.gmra.mxu1 %v2675_v53  ;;  %v1832_v54 = vpop.f32.mrf.mxu2 }
  0xd5   :  { %v1834_v58 = vpop.f32.mrf.mxu3 }
  0xd6   :  { %v222_v59 = vpop.f32.mrf.mxu0 }
  0xd7   :  { %v1837_v57 = vadd.f32 %v222_v59, %v1759_v8  ;;  %v287_v61 = vpop.f32.mrf.mxu1 }
  0xd8   :  { %v1840_v62 = vadd.f32 %v287_v61, %v1762_v13 }
  0xd9   :  { %375 = vmatmul.f32.gmra.mxu2 %v1710_v1  ;;  %v2665_v63 = vmax.f32 %v1837_v57, 0.0 }
  0xda   :  { %440 = vmatmul.f32.gmra.mxu3 %v1710_v1  ;;  %v2661_v2 = vmax.f32 %v1840_v62, 0.0 }
  0xdb   :  { %679 = vmatmul.f32.gmra.mxu0 %v2665_v63 }
  0xdc   :  { %744 = vmatmul.f32.gmra.mxu1 %v2661_v2  ;;  %v1850_v56 = vpop.f32.mrf.mxu2 }
  0xdd   :  { %v1852_v4 = vpop.f32.mrf.mxu3 }
  0xde   :  { %v225_v5 = vpop.f32.mrf.mxu0 }
  0xdf   :  { %v1855_v6 = vadd.f32 %v225_v5, %v1759_v8  ;;  %v290_v7 = vpop.f32.mrf.mxu1  ;;  %v608_v5 = vld [vmem:[#allocation8 + $0x2d8] sm:$0xff] }
  0xe0   :  { %v1858_v1 = vadd.f32 %v290_v7, %v1762_v13  ;;  %1043 = vmatpush.msrb.mxu2 %v608_v5 }
  0xe1   :  { %378 = vmatmul.f32.gmra.mxu2 %v1718_v9  ;;  %v2658_v0 = vmax.f32 %v1855_v6, 0.0 }
  0xe2   :  { %443 = vmatmul.f32.gmra.mxu3 %v1718_v9  ;;  %v2657_v10 = vmax.f32 %v1858_v1, 0.0  ;;  %1044 = vmatpush.msrb.mxu2 %v606_v47 }
  0xe3   :  { %682 = vmatmul.f32.gmra.mxu0 %v2658_v0  ;;  %v560_v0 = vld [vmem:[#allocation8 + $0x158] sm:$0xff] }
  0xe4   :  { %747 = vmatmul.f32.gmra.mxu1 %v2657_v10  ;;  %v1868_v16 = vpop.f32.mrf.mxu2 }
  0xe5   :  { %v1870_v23 = vpop.f32.mrf.mxu3  ;;  %v2034_v63 = vadd.f32 %v1868_v16, %v1759_v8 }
  0xe6   :  { %v228_v25 = vpop.f32.mrf.mxu0 }
  0xe7   :  { %v1873_v9 = vadd.f32 %v228_v25, %v1759_v8  ;;  %v293_v27 = vpop.f32.mrf.mxu1 }
  0xe8   :  { %v1876_v29 = vadd.f32 %v293_v27, %v1762_v13  ;;  %v576_v27 = vld [vmem:[#allocation8 + $0x1d8] sm:$0xff] }
  0xe9   :  { %381 = vmatmul.f32.gmra.mxu2 %v1726_v15  ;;  %v2654_v35 = vmax.f32 %v1873_v9, 0.0  ;;  %978 = vmatpush.msra.mxu1 %v576_v27 }
  0xea   :  { %446 = vmatmul.f32.gmra.mxu3 %v1726_v15  ;;  %v2651_v37 = vmax.f32 %v1876_v29, 0.0 }
  0xeb   :  { %685 = vmatmul.f32.gmra.mxu0 %v2654_v35 }
  0xec   :  { %750 = vmatmul.f32.gmra.mxu1 %v2651_v37  ;;  %v1886_v43 = vpop.f32.mrf.mxu2  ;;  %v568_v37 = vld [vmem:[#allocation8 + $0x198] sm:$0xff] }
  0xed   :  { %v1888_v49 = vpop.f32.mrf.mxu3 }
  0xee   :  { %v231_v48 = vpop.f32.mrf.mxu0 }
  0xef   :  { %v1891_v15 = vadd.f32 %v231_v48, %v1759_v8  ;;  %v296_v55 = vpop.f32.mrf.mxu1  ;;  %v542_v48 = vld [vmem:[#allocation8 + $0xc8] sm:$0xff] }
  0xf0   :  { %v1894_v59 = vadd.f32 %v296_v55, %v1762_v13  ;;  %v638_v55 = vld [vmem:[#allocation8 + $0x3c8] sm:$0xff]  ;;  %914 = vmatpush.msra.mxu0 %v542_v48 }
  0xf1   :  { %384 = vmatmul.f32.gmra.mxu2 %v1734_v19  ;;  %v2650_v61 = vmax.f32 %v1891_v15, 0.0  ;;  %1109 = vmatpush.msrb.mxu3 %v638_v55  ;;  %v540_v55 = vld [vmem:[#allocation8 + $0xb8] sm:$0xff] }
  0xf2   :  { %449 = vmatmul.f32.gmra.mxu3 %v1734_v19  ;;  %v2649_v3 = vmax.f32 %v1894_v59, 0.0  ;;  %v1914_v19 = vadd.f32 %v1780_v26, %v1762_v13  ;;  %915 = vmatpush.msra.mxu0 %v540_v55  ;;  %v534_v55 = vld [vmem:[#allocation8 + $0x88] sm:$0xff] }
  0xf3   :  { %688 = vmatmul.f32.gmra.mxu0 %v2650_v61 }
  0xf4   :  { %753 = vmatmul.f32.gmra.mxu1 %v2649_v3  ;;  %v1904_v7 = vpop.f32.mrf.mxu2  ;;  %v2643_v45 = vmax.f32 %v1914_v19, 0.0  ;;  %v570_v3 = vld [vmem:[#allocation8 + $0x1a8] sm:$0xff] }
  0xf5   :  { %v1910_v25 = vpop.f32.mrf.mxu3 }
  0xf6   :  { %v2093_v53 = vadd.f32 %v1910_v25, %v1762_v13 }
  0xfb   :  { %691 = vmatmul.f32.gmra.mxu0 %v2646_v32 }
  0xfc   :  { %756 = vmatmul.f32.gmra.mxu1 %v2643_v45  ;;  %v340_v26 = vpop.f32.mrf.mxu2  ;;  %v574_v45 = vld [vmem:[#allocation8 + $0x1c8] sm:$0xff] }
  0xfd   :  { %v1933_v5 = vadd.f32 %v340_v26, %v1918_v41  ;;  %v405_v11 = vpop.f32.mrf.mxu3  ;;  %979 = vmatpush.msra.mxu1 %v574_v45  ;;  %v604_v26 = vld [vmem:[#allocation8 + $0x2b8] sm:$0xff]  ;;  %v1956_v45 = vadd.f32 %v1814_v44, %v1759_v8 }
  0xfe   :  { %v1940_v14 = vadd.f32 %v405_v11, %v1922_v24  ;;  %1045 = vmatpush.msrb.mxu2 %v604_v26  ;;  %v636_v11 = vld [vmem:[#allocation8 + $0x3b8] sm:$0xff]  ;;  %v1963_v26 = vadd.f32 %v1816_v46, %v1762_v13 }
  0xff   :  { %v2644_v27 = vmax.f32 %v1933_v5, 0.0  ;;  %1110 = vmatpush.msrb.mxu3 %v636_v11  ;;  %v2656_v46 = vmax.f32 %v1956_v45, 0.0  ;;  %v634_v11 = vld [vmem:[#allocation8 + $0x3a8] sm:$0xff] }
 0x100   :  { %v2645_v47 = vmax.f32 %v1940_v14, 0.0 }
 0x101   :  { %797 = vmatmul.f32.vlgmr.msra.gmra.mxu2 %v2644_v27  ;;  %v572_v27 = vld [vmem:[#allocation8 + $0x1b8] sm:$0xff]  ;;  %1111 = vmatpush.msrb.mxu3 %v634_v11  ;;  %v526_v11 = vld [vmem:[#allocation8 + $0x48] sm:$0xff] }
 0x102   :  { %862 = vmatmul.f32.vlgmr.msra.gmra.mxu3 %v2645_v47  ;;  %980 = vmatpush.msra.mxu1 %v572_v27  ;;  %v602_v27 = vld [vmem:[#allocation8 + $0x2a8] sm:$0xff] }
 0x103   :  { %694 = vmatmul.f32.gmra.mxu0 %v2648_v34  ;;  %v538_v34 = vld [vmem:[#allocation8 + $0xa8] sm:$0xff]  ;;  %1046 = vmatpush.msrb.mxu2 %v602_v27  ;;  %v1989_v27 = vadd.f32 %v1834_v58, %v1762_v13 }
 0x104   :  { %759 = vmatmul.f32.gmra.mxu1 %v2647_v36  ;;  %v343_v48 = vpop.f32.mrf.mxu2  ;;  %916 = vmatpush.msra.mxu0 %v538_v34  ;;  %v566_v34 = vld [vmem:[#allocation8 + $0x188] sm:$0xff] }
 0x105   :  { %v1959_v47 = vadd.f32 %v343_v48, %v1918_v41  ;;  %v408_v32 = vpop.f32.mrf.mxu3  ;;  %981 = vmatpush.msra.mxu1 %v570_v3  ;;  %v536_v48 = vld [vmem:[#allocation8 + $0x98] sm:$0xff] }
 0x106   :  { %v1966_v36 = vadd.f32 %v408_v32, %v1922_v24  ;;  %917 = vmatpush.msra.mxu0 %v536_v48  ;;  %v2655_v32 = vmax.f32 %v1963_v26, 0.0  ;;  %v532_v48 = vld [vmem:[#allocation8 + $0x78] sm:$0xff] }
 0x107   :  { %v2652_v61 = vmax.f32 %v1959_v47, 0.0  ;;  %982 = vmatpush.msra.mxu1 %v568_v37 }
 0x108   :  { %v2653_v44 = vmax.f32 %v1966_v36, 0.0  ;;  %918 = vmatpush.msra.mxu0 %v534_v55  ;;  %v530_v55 = vld [vmem:[#allocation8 + $0x68] sm:$0xff] }
 0x109   :  { %800 = vmatmul.f32.gmra.mxu2 %v2652_v61  ;;  %v564_v61 = vld [vmem:[#allocation8 + $0x178] sm:$0xff]  ;;  %983 = vmatpush.msra.mxu1 %v566_v34 }
 0x10a   :  { %865 = vmatmul.f32.gmra.mxu3 %v2653_v44  ;;  %v1982_v44 = vadd.f32 %v1832_v54, %v1759_v8  ;;  %919 = vmatpush.msra.mxu0 %v532_v48  ;;  %v600_v34 = vld [vmem:[#allocation8 + $0x298] sm:$0xff] }
 0x10b   :  { %697 = vmatmul.f32.gmra.mxu0 %v2656_v46  ;;  %v562_v46 = vld [vmem:[#allocation8 + $0x168] sm:$0xff]  ;;  %984 = vmatpush.msra.mxu1 %v564_v61 }
 0x10c   :  { %762 = vmatmul.f32.gmra.mxu1 %v2655_v32  ;;  %v346_v3 = vpop.f32.mrf.mxu2  ;;  %920 = vmatpush.msra.mxu0 %v530_v55  ;;  %v2663_v58 = vmax.f32 %v1982_v44, 0.0  ;;  %v558_v61 = vld [vmem:[#allocation8 + $0x148] sm:$0xff]  ;;  %v632_v55 = vld [vmem:[#allocation8 + $0x398] sm:$0xff] }
 0x10d   :  { %v1985_v37 = vadd.f32 %v346_v3, %v1918_v41  ;;  %v411_v35 = vpop.f32.mrf.mxu3  ;;  %v528_v3 = vld [vmem:[#allocation8 + $0x58] sm:$0xff]  ;;  %985 = vmatpush.msra.mxu1 %v562_v46  ;;  %1047 = vmatpush.msrb.mxu2 %v600_v34  ;;  %v522_v34 = vld [vmem:[#allocation8 + $0x28] sm:$0xff] }
 0x10e   :  { %v1992_v32 = vadd.f32 %v411_v35, %v1922_v24  ;;  %v2662_v35 = vmax.f32 %v1989_v27, 0.0  ;;  %921 = vmatpush.msra.mxu0 %v528_v3  ;;  %v524_v46 = vld [vmem:[#allocation8 + $0x38] sm:$0xff]  ;;  %1112 = vmatpush.msrb.mxu3 %v632_v55  ;;  %v518_v55 = vld [vmem:[#allocation8 + $0x8] sm:$0xff] }
 0x10f   :  { %v2659_v10 = vmax.f32 %v1985_v37, 0.0  ;;  %986 = vmatpush.msra.mxu1 %v560_v0  ;;  %v2015_v0 = vadd.f32 %v1852_v4, %v1762_v13  ;;  %v520_v4 = vld [vmem:[#allocation8 + $0x18] sm:$0xff] }
 0x110   :  { %v2660_v54 = vmax.f32 %v1992_v32, 0.0  ;;  %922 = vmatpush.msra.mxu0 %v526_v11 }
 0x111   :  { %803 = vmatmul.f32.gmra.mxu2 %v2659_v10  ;;  %v556_v10 = vld [vmem:[#allocation8 + $0x138] sm:$0xff]  ;;  %987 = vmatpush.msra.mxu1 %v558_v61 }
 0x112   :  { %868 = vmatmul.f32.gmra.mxu3 %v2660_v54  ;;  %v2008_v54 = vadd.f32 %v1850_v56, %v1759_v8  ;;  %923 = vmatpush.msra.mxu0 %v524_v46  ;;  %v554_v56 = vld [vmem:[#allocation8 + $0x128] sm:$0xff]  ;;  %v552_v61 = vld [vmem:[#allocation8 + $0x118] sm:$0xff] }
 0x113   :  { %700 = vmatmul.f32.gmra.mxu0 %v2663_v58  ;;  %988 = vmatpush.msra.mxu1 %v556_v10  ;;  %v598_v10 = vld [vmem:[#allocation8 + $0x288] sm:$0xff] }
 0x114   :  { %765 = vmatmul.f32.gmra.mxu1 %v2662_v35  ;;  %v349_v48 = vpop.f32.mrf.mxu2  ;;  %v2667_v11 = vmax.f32 %v2008_v54, 0.0  ;;  %924 = vmatpush.msra.mxu0 %v522_v34  ;;  %v630_v34 = vld [vmem:[#allocation8 + $0x388] sm:$0xff] }
 0x115   :  { %v2011_v3 = vadd.f32 %v349_v48, %v1918_v41  ;;  %v414_v2 = vpop.f32.mrf.mxu3  ;;  %989 = vmatpush.msra.mxu1 %v554_v56  ;;  %1048 = vmatpush.msrb.mxu2 %v598_v10  ;;  %v596_v10 = vld [vmem:[#allocation8 + $0x278] sm:$0xff] }
 0x116   :  { %v2018_v35 = vadd.f32 %v414_v2, %v1922_v24  ;;  %v2668_v2 = vmax.f32 %v2015_v0, 0.0  ;;  %925 = vmatpush.msra.mxu0 %v520_v4  ;;  %1113 = vmatpush.msrb.mxu3 %v630_v34 }
 0x117   :  { %v2664_v58 = vmax.f32 %v2011_v3, 0.0  ;;  %990 = vmatpush.msra.mxu1 %v552_v61  ;;  %v2670_v61 = vmax.f32 %v2034_v63, 0.0  ;;  %1049 = vmatpush.msrb.mxu2 %v596_v10 }
 0x118   :  { %v2666_v48 = vmax.f32 %v2018_v35, 0.0  ;;  %926 = vmatpush.msra.mxu0 %v518_v55  ;;  %v628_v55 = vld [vmem:[#allocation8 + $0x378] sm:$0xff] }
 0x119   :  { %806 = vmatmul.f32.gmra.mxu2 %v2664_v58  ;;  %v550_v58 = vld [vmem:[#allocation8 + $0x108] sm:$0xff]  ;;  %1114 = vmatpush.msrb.mxu3 %v628_v55 }
 0x11a   :  { %871 = vmatmul.f32.gmra.mxu3 %v2666_v48  ;;  %991 = vmatpush.msra.mxu1 %v550_v58 }
 0x11b   :  { %703 = vmatmul.f32.gmra.mxu0 %v2667_v11  ;;  %v2041_v11 = vadd.f32 %v1870_v23, %v1762_v13 }
 0x11c   :  { %768 = vmatmul.f32.gmra.mxu1 %v2668_v2  ;;  %v352_v46 = vpop.f32.mrf.mxu2 }
 0x11d   :  { %v2037_v48 = vadd.f32 %v352_v46, %v1918_v41  ;;  %v417_v56 = vpop.f32.mrf.mxu3  ;;  %v2671_v23 = vmax.f32 %v2041_v11, 0.0  ;;  %v2060_v46 = vadd.f32 %v1886_v43, %v1759_v8 }
 0x11e   :  { %v2044_v2 = vadd.f32 %v417_v56, %v1922_v24 }
 0x11f   :  { %v2673_v4 = vmax.f32 %v2037_v48, 0.0  ;;  %v2676_v43 = vmax.f32 %v2060_v46, 0.0 }
 0x120   :  { %v2669_v16 = vmax.f32 %v2044_v2, 0.0 }
 0x121   :  { %809 = vmatmul.f32.gmra.mxu2 %v2673_v4 }
 0x122   :  { %874 = vmatmul.f32.gmra.mxu3 %v2669_v16  ;;  %v2067_v16 = vadd.f32 %v1888_v49, %v1762_v13  ;;  %v594_v49 = vld [vmem:[#allocation8 + $0x268] sm:$0xff]  ;;  %v592_v13 = vld [vmem:[#allocation8 + $0x258] sm:$0xff] }
 0x123   :  { %706 = vmatmul.f32.gmra.mxu0 %v2670_v61  ;;  %1050 = vmatpush.msrb.mxu2 %v594_v49 }
 0x124   :  { %771 = vmatmul.f32.gmra.mxu1 %v2671_v23  ;;  %v355_v58 = vpop.f32.mrf.mxu2 }
 0x125   :  { %v2063_v34 = vadd.f32 %v355_v58, %v1918_v41  ;;  %v420_v56 = vpop.f32.mrf.mxu3  ;;  %v2677_v58 = vmax.f32 %v2067_v16, 0.0  ;;  %1051 = vmatpush.msrb.mxu2 %v592_v13  ;;  %v590_v13 = vld [vmem:[#allocation8 + $0x248] sm:$0xff] }
 0x126   :  { %v2070_v61 = vadd.f32 %v420_v56, %v1922_v24  ;;  %v626_v56 = vld [vmem:[#allocation8 + $0x368] sm:$0xff] }
 0x127   :  { %v2672_v23 = vmax.f32 %v2063_v34, 0.0  ;;  %1115 = vmatpush.msrb.mxu3 %v626_v56  ;;  %1052 = vmatpush.msrb.mxu2 %v590_v13  ;;  %v620_v13 = vld [vmem:[#allocation8 + $0x338] sm:$0xff] }
 0x128   :  { %v2674_v10 = vmax.f32 %v2070_v61, 0.0 }
 0x129   :  { %812 = vmatmul.f32.gmra.mxu2 %v2672_v23  ;;  %v2086_v23 = vadd.f32 %v1904_v7, %v1759_v8  ;;  %v2682_v7 = vmax.f32 %v2093_v53, 0.0 }
 0x12a   :  { %877 = vmatmul.f32.gmra.mxu3 %v2674_v10 }
 0x12b   :  { %709 = vmatmul.f32.gmra.mxu0 %v2676_v43  ;;  %v2681_v8 = vmax.f32 %v2086_v23, 0.0 }
 0x12c   :  { %774 = vmatmul.f32.gmra.mxu1 %v2677_v58  ;;  %v358_v55 = vpop.f32.mrf.mxu2 }
 0x12d   :  { %v2089_v4 = vadd.f32 %v358_v55, %v1918_v41  ;;  %v423_v10 = vpop.f32.mrf.mxu3 }
 0x12e   :  { %v2096_v43 = vadd.f32 %v423_v10, %v1922_v24  ;;  %v624_v10 = vld [vmem:[#allocation8 + $0x358] sm:$0xff] }
 0x12f   :  { %v2678_v58 = vmax.f32 %v2089_v4, 0.0  ;;  %1116 = vmatpush.msrb.mxu3 %v624_v10  ;;  %v622_v10 = vld [vmem:[#allocation8 + $0x348] sm:$0xff] }
 0x130   :  { %v2679_v49 = vmax.f32 %v2096_v43, 0.0 }
 0x131   :  { %815 = vmatmul.f32.gmra.mxu2 %v2678_v58  ;;  %1117 = vmatpush.msrb.mxu3 %v622_v10 }
 0x132   :  { %880 = vmatmul.f32.gmra.mxu3 %v2679_v49 }
 0x133   :  { %712 = vmatmul.f32.gmra.mxu0 %v2681_v8  ;;  %1118 = vmatpush.msrb.mxu3 %v620_v13 }
 0x134   :  { %777 = vmatmul.f32.gmra.mxu1 %v2682_v7  ;;  %v361_v25 = vpop.f32.mrf.mxu2 }
 0x135   :  { %v2111_v55 = vadd.f32 %v361_v25, %v1918_v41  ;;  %v426_v56 = vpop.f32.mrf.mxu3 }
 0x136   :  { %v2114_v58 = vadd.f32 %v426_v56, %v1922_v24 }
 0x137   :  { %v2683_v49 = vmax.f32 %v2111_v55, 0.0 }
 0x138   :  { %v2684_v52 = vmax.f32 %v2114_v58, 0.0  ;;  %v2118_v8 = vpop.f32.mrf.mxu0 }
 0x139   :  { %818 = vmatmul.f32.gmra.mxu2 %v2683_v49  ;;  %v2142_v21 = vpop.f32.mrf.mxu1 }
 0x13a   :  { %883 = vmatmul.f32.gmra.mxu3 %v2684_v52 }
 0x13b   :  { %927 = vmatmul.f32.vlgmr.msra.gmra.mxu0 %v453_v18 }
 0x13c   :  { %992 = vmatmul.f32.vlgmr.msra.gmra.mxu1 %v454_v22  ;;  %v364_v25 = vpop.f32.mrf.mxu2  ;;  %v588_v22 = vld [vmem:[#allocation8 + $0x238] sm:$0xff] }
 0x13d   :  { %v2129_v56 = vadd.f32 %v364_v25, %v1918_v41  ;;  %v429_v7 = vpop.f32.mrf.mxu3  ;;  %1053 = vmatpush.msrb.mxu2 %v588_v22  ;;  %v618_v22 = vld [vmem:[#allocation8 + $0x328] sm:$0xff] }
 0x13e   :  { %v2132_v49 = vadd.f32 %v429_v7, %v1922_v24  ;;  %1119 = vmatpush.msrb.mxu3 %v618_v22  ;;  %v616_v22 = vld [vmem:[#allocation8 + $0x318] sm:$0xff] }
 0x13f   :  { %v2685_v52 = vmax.f32 %v2129_v56, 0.0  ;;  %1054 = vmatpush.msrb.mxu2 %v586_v33  ;;  %v2713_v33 = vmax.f32 %v1822_v51, 0.0  ;;  %v2715_v51 = vmax.f32 %v1837_v57, 0.0 }
 0x140   :  { %v2686_v17 = vmax.f32 %v2132_v49, 0.0  ;;  %v2136_v18 = vpop.f32.mrf.mxu0  ;;  %1120 = vmatpush.msrb.mxu3 %v616_v22 }
 0x141   :  { %821 = vmatmul.f32.gmra.mxu2 %v2685_v52 }
 0x142   :  { %886 = vmatmul.f32.gmra.mxu3 %v2686_v17 }
 0x143   :  { %930 = vmatmul.f32.gmra.mxu0 %v457_v30 }
 0x144   :  { %995 = vmatmul.f32.gmra.mxu1 %v458_v31  ;;  %v367_v7 = vpop.f32.mrf.mxu2 }
 0x145   :  { %v2149_v25 = vadd.f32 %v367_v7, %v1918_v41  ;;  %v432_v10 = vpop.f32.mrf.mxu3  ;;  %v2166_v7 = vpop.f32.mrf.mxu1 }
 0x146   :  { %v2152_v52 = vadd.f32 %v432_v10, %v1922_v24 }
 0x147   :  { %v2687_v17 = vmax.f32 %v2149_v25, 0.0 }
 0x148   :  { %2709 = vst [vmem:[#allocation16_spill] sm:$0xff] %v2152_v52  ;;  %v2688_v28 = vmax.f32 %v2152_v52, 0.0  ;;  %v2156_v30 = vpop.f32.mrf.mxu0 }
 0x149   :  { %824 = vmatmul.f32.gmra.mxu2 %v2687_v17 }
 0x14a   :  { %889 = vmatmul.f32.gmra.mxu3 %v2688_v28 }
 0x14b   :  { %933 = vmatmul.f32.gmra.mxu0 %v461_v42 }
 0x14c   :  { %998 = vmatmul.f32.gmra.mxu1 %v462_v40  ;;  %v370_v31 = vpop.f32.mrf.mxu2  ;;  %v584_v40 = vld [vmem:[#allocation8 + $0x218] sm:$0xff] }
 0x14d   :  { %v2169_v13 = vadd.f32 %v370_v31, %v1918_v41  ;;  %v435_v10 = vpop.f32.mrf.mxu3  ;;  %1055 = vmatpush.msrb.mxu2 %v584_v40  ;;  %v582_v40 = vld [vmem:[#allocation8 + $0x208] sm:$0xff] }
 0x14e   :  { %v2172_v17 = vadd.f32 %v435_v10, %v1922_v24 }
 0x14f   :  { %2710 = vst [vmem:[#allocation17_spill] sm:$0xff] %v2169_v13  ;;  %v2690_v38 = vmax.f32 %v2169_v13, 0.0  ;;  %1056 = vmatpush.msrb.mxu2 %v582_v40 }
 0x150   :  { %2711 = vst [vmem:[#allocation18_spill] sm:$0xff] %v2172_v17  ;;  %v2692_v42 = vmax.f32 %v2172_v17, 0.0  ;;  %v2176_v28 = vpop.f32.mrf.mxu0  ;;  %v2192_v17 = vpop.f32.mrf.mxu1 }
 0x151   :  { %827 = vmatmul.f32.gmra.mxu2 %v2690_v38 }
 0x152   :  { %892 = vmatmul.f32.gmra.mxu3 %v2692_v42 }
 0x153   :  { %936 = vmatmul.f32.gmra.mxu0 %v2712_v39 }
 0x154   :  { %1001 = vmatmul.f32.gmra.mxu1 %v2713_v33  ;;  %v373_v31 = vpop.f32.mrf.mxu2 }
 0x155   :  { %v2187_v10 = vadd.f32 %v373_v31, %v1918_v41  ;;  %v438_v52 = vpop.f32.mrf.mxu3  ;;  %v614_v31 = vld [vmem:[#allocation8 + $0x308] sm:$0xff] }
 0x156   :  { %v2190_v38 = vadd.f32 %v438_v52, %v1922_v24  ;;  %v2716_v52 = vmax.f32 %v1840_v62, 0.0  ;;  %1121 = vmatpush.msrb.mxu3 %v614_v31  ;;  %v2719_v62 = vmax.f32 %v1855_v6, 0.0 }
 0x157   :  { %v2694_v50 = vmax.f32 %v2187_v10, 0.0 }
 0x158   :  { %2714 = vst [vmem:[#allocation19_spill] sm:$0xff] %v2190_v38  ;;  %v2695_v39 = vmax.f32 %v2190_v38, 0.0  ;;  %v2196_v42 = vpop.f32.mrf.mxu0  ;;  %v2216_v38 = vpop.f32.mrf.mxu1 }
 0x159   :  { %830 = vmatmul.f32.gmra.mxu2 %v2694_v50 }
 0x15a   :  { %895 = vmatmul.f32.gmra.mxu3 %v2695_v39 }
 0x15b   :  { %939 = vmatmul.f32.gmra.mxu0 %v2715_v51 }
 0x15c   :  { %1004 = vmatmul.f32.gmra.mxu1 %v2716_v52  ;;  %v376_v33 = vpop.f32.mrf.mxu2 }
 0x15d   :  { %v2207_v22 = vadd.f32 %v376_v33, %v1918_v41  ;;  %v441_v13 = vpop.f32.mrf.mxu3 }
 0x15e   :  { %v2210_v50 = vadd.f32 %v441_v13, %v1922_v24  ;;  %v2720_v13 = vmax.f32 %v1858_v1, 0.0  ;;  %v2723_v1 = vmax.f32 %v1873_v9, 0.0 }
 0x15f   :  { %2717 = vst [vmem:[#allocation20_spill] sm:$0xff] %v2207_v22  ;;  %v2698_v39 = vmax.f32 %v2207_v22, 0.0 }
 0x160   :  { %2718 = vst [vmem:[#allocation21_spill] sm:$0xff] %v2210_v50  ;;  %v2700_v57 = vmax.f32 %v2210_v50, 0.0  ;;  %v2214_v51 = vpop.f32.mrf.mxu0  ;;  %v2240_v6 = vpop.f32.mrf.mxu1 }
 0x161   :  { %833 = vmatmul.f32.gmra.mxu2 %v2698_v39 }
 0x162   :  { %898 = vmatmul.f32.gmra.mxu3 %v2700_v57 }
 0x163   :  { %942 = vmatmul.f32.gmra.mxu0 %v2719_v62  ;;  %v1218_v62 = vld [vmem:[#allocation10 + $0x78] sm:$0xff] }
 0x164   :  { %1007 = vmatmul.f32.gmra.mxu1 %v2720_v13  ;;  %v379_v40 = vpop.f32.mrf.mxu2  ;;  %v2724_v13 = vmax.f32 %v1876_v29, 0.0  ;;  %1239 = vmatpush.msrb.mxu0 %v1218_v62  ;;  %v2726_v29 = vmax.f32 %v1891_v15, 0.0  ;;  %v1217_v62 = vld [vmem:[#allocation10 + $0x70] sm:$0xff] }
 0x165   :  { %v2227_v52 = vadd.f32 %v379_v40, %v1918_v41  ;;  %v444_v33 = vpop.f32.mrf.mxu3 }
 0x166   :  { %v2230_v31 = vadd.f32 %v444_v33, %v1922_v24  ;;  %v1234_v33 = vld [vmem:[#allocation10 + $0xf8] sm:$0xff]  ;;  %1240 = vmatpush.msrb.mxu0 %v1217_v62  ;;  %v2729_v62 = vmax.f32 %v1914_v19, 0.0  ;;  %v2733_v19 = vmax.f32 %v1937_v12, 0.0  ;;  %v2735_v12 = vmax.f32 %v1966_v36, 0.0  ;;  %v1208_v36 = vld [vmem:[#allocation10 + $0x28] sm:$0xff] }
 0x167   :  { %2721 = vst [vmem:[#allocation22_spill] sm:$0xff] %v2227_v52  ;;  %v2702_v22 = vmax.f32 %v2227_v52, 0.0  ;;  %1304 = vmatpush.msrb.mxu1 %v1234_v33 }
 0x168   :  { %2722 = vst [vmem:[#allocation23_spill] sm:$0xff] %v2230_v31  ;;  %v2703_v39 = vmax.f32 %v2230_v31, 0.0  ;;  %v2234_v50 = vpop.f32.mrf.mxu0  ;;  %v2264_v33 = vpop.f32.mrf.mxu1 }
 0x169   :  { %836 = vmatmul.f32.gmra.mxu2 %v2702_v22 }
 0x16a   :  { %901 = vmatmul.f32.gmra.mxu3 %v2703_v39 }
 0x16b   :  { %945 = vmatmul.f32.gmra.mxu0 %v2723_v1 }
 0x16c   :  { %1010 = vmatmul.f32.gmra.mxu1 %v2724_v13  ;;  %v382_v40 = vpop.f32.mrf.mxu2  ;;  %v2727_v13 = vmax.f32 %v1894_v59, 0.0  ;;  %v2728_v59 = vmax.f32 %v1908_v20, 0.0  ;;  %v2732_v20 = vmax.f32 %v1930_v60, 0.0  ;;  %v2734_v60 = vmax.f32 %v1959_v47, 0.0 }
 0x16d   :  { %v2247_v57 = vadd.f32 %v382_v40, %v1918_v41  ;;  %v447_v52 = vpop.f32.mrf.mxu3  ;;  %v1233_v40 = vld [vmem:[#allocation10 + $0xf0] sm:$0xff] }
 0x16e   :  { %v2250_v22 = vadd.f32 %v447_v52, %v1922_v24  ;;  %1305 = vmatpush.msrb.mxu1 %v1233_v40  ;;  %v2731_v40 = vmax.f32 %v1940_v14, 0.0  ;;  %v1212_v14 = vld [vmem:[#allocation10 + $0x48] sm:$0xff] }
 0x16f   :  { %2725 = vst [vmem:[#allocation24_spill] sm:$0xff] %v2247_v57  ;;  %v2706_v39 = vmax.f32 %v2247_v57, 0.0 }
 0x170   :  { %v2707_v9 = vmax.f32 %v2250_v22, 0.0  ;;  %v2254_v1 = vpop.f32.mrf.mxu0 }
 0x171   :  { %839 = vmatmul.f32.gmra.mxu2 %v2706_v39 }
 0x172   :  { %904 = vmatmul.f32.gmra.mxu3 %v2707_v9 }
 0x173   :  { %948 = vmatmul.f32.gmra.mxu0 %v2726_v29 }
 0x174   :  { %1013 = vmatmul.f32.gmra.mxu1 %v2727_v13  ;;  %v385_v52 = vpop.f32.mrf.mxu2 }
 0x175   :  { %v2267_v31 = vadd.f32 %v385_v52, %v1918_v41  ;;  %v450_v57 = vpop.f32.mrf.mxu3  ;;  %v1216_v41 = vld [vmem:[#allocation10 + $0x68] sm:$0xff]  ;;  %v2730_v52 = vmax.f32 %v1933_v5, 0.0  ;;  %v1213_v5 = vld [vmem:[#allocation10 + $0x50] sm:$0xff] }
 0x176   :  { %v2270_v39 = vadd.f32 %v450_v57, %v1922_v24  ;;  %1241 = vmatpush.msrb.mxu0 %v1216_v41  ;;  %v1232_v24 = vld [vmem:[#allocation10 + $0xe8] sm:$0xff]  ;;  %v2284_v57 = vpop.f32.mrf.mxu1  ;;  %v1231_v41 = vld [vmem:[#allocation10 + $0xe0] sm:$0xff] }
 0x177   :  { %v515_v15 = vmax.f32 %v2267_v31, 0.0  ;;  %1306 = vmatpush.msrb.mxu1 %v1232_v24 }
 0x178   :  { %v2708_v29 = vmax.f32 %v2270_v39, 0.0  ;;  %v2274_v9 = vpop.f32.mrf.mxu0 }
 0x179   :  { %842 = vmatmul.f32.gmra.mxu2 %v515_v15  ;;  %1307 = vmatpush.msrb.mxu1 %v1231_v41 }
 0x17a   :  { %907 = vmatmul.f32.gmra.mxu3 %v2708_v29  ;;  %v1215_v29 = vld [vmem:[#allocation10 + $0x60] sm:$0xff] }
 0x17b   :  { %951 = vmatmul.f32.gmra.mxu0 %v2728_v59 }
 0x17c   :  { %1016 = vmatmul.f32.gmra.mxu1 %v2729_v62  ;;  %1242 = vmatpush.msrb.mxu0 %v1215_v29  ;;  %v1214_v62 = vld [vmem:[#allocation10 + $0x58] sm:$0xff]  ;;  %v1211_v29 = vld [vmem:[#allocation10 + $0x40] sm:$0xff] }
 0x17e   :  { %1243 = vmatpush.msrb.mxu0 %v1214_v62  ;;  %v1230_v62 = vld [vmem:[#allocation10 + $0xd8] sm:$0xff] }
 0x17f   :  { %1308 = vmatpush.msrb.mxu1 %v1230_v62 }
 0x180   :  { %v2286_v13 = vpop.f32.mrf.mxu0  ;;  %1244 = vmatpush.msrb.mxu0 %v1213_v5  ;;  %v1210_v5 = vld [vmem:[#allocation10 + $0x38] sm:$0xff] }
 0x181   :  { %1057 = vmatmul.f32.vlgmr.msrb.gmra.mxu2 %v2730_v52  ;;  %v2300_v52 = vpop.f32.mrf.mxu1 }
 0x182   :  { %1122 = vmatmul.f32.vlgmr.msrb.gmra.mxu3 %v2731_v40  ;;  %1245 = vmatpush.msrb.mxu0 %v1212_v14  ;;  %v2738_v14 = vmax.f32 %v1985_v37, 0.0  ;;  %v1229_v37 = vld [vmem:[#allocation10 + $0xd0] sm:$0xff] }
 0x183   :  { %954 = vmatmul.f32.gmra.mxu0 %v2732_v20  ;;  %v2736_v20 = vmax.f32 %v1956_v45, 0.0  ;;  %v2739_v45 = vmax.f32 %v1992_v32, 0.0  ;;  %1309 = vmatpush.msrb.mxu1 %v1229_v37  ;;  %v1205_v32 = vld [vmem:[#allocation10 + $0x10] sm:$0xff] }
 0x184   :  { %1019 = vmatmul.f32.gmra.mxu1 %v2733_v19  ;;  %v2296_v59 = vpop.f32.mrf.mxu2  ;;  %v2737_v19 = vmax.f32 %v1963_v26, 0.0  ;;  %1246 = vmatpush.msrb.mxu0 %v1211_v29  ;;  %v1207_v26 = vld [vmem:[#allocation10 + $0x20] sm:$0xff]  ;;  %v2740_v29 = vmax.f32 %v1982_v44, 0.0  ;;  %v2742_v44 = vmax.f32 %v2011_v3, 0.0 }
 0x185   :  { %v2298_v24 = vpop.f32.mrf.mxu3 }
 0x186   :  { %1247 = vmatpush.msrb.mxu0 %v1210_v5  ;;  %v1206_v5 = vld [vmem:[#allocation10 + $0x18] sm:$0xff] }
 0x188   :  { %v2304_v40 = vpop.f32.mrf.mxu0 }
 0x189   :  { %1060 = vmatmul.f32.gmra.mxu2 %v2734_v60  ;;  %v1209_v60 = vld [vmem:[#allocation10 + $0x30] sm:$0xff] }
 0x18a   :  { %1125 = vmatmul.f32.gmra.mxu3 %v2735_v12  ;;  %1248 = vmatpush.msrb.mxu0 %v1209_v60  ;;  %v2320_v12 = vpop.f32.mrf.mxu1 }
 0x18b   :  { %957 = vmatmul.f32.gmra.mxu0 %v2736_v20 }
 0x18c   :  { %1022 = vmatmul.f32.gmra.mxu1 %v2737_v19  ;;  %v2312_v41 = vpop.f32.mrf.mxu2  ;;  %1249 = vmatpush.msrb.mxu0 %v1208_v36  ;;  %v2741_v19 = vmax.f32 %v1989_v27, 0.0  ;;  %v1204_v36 = vld [vmem:[#allocation10 + $0x8] sm:$0xff]  ;;  %v1203_v27 = vld [vmem:[#allocation10] sm:$0xff] }
 0x18d   :  { %v2314_v47 = vpop.f32.mrf.mxu3 }
 0x18e   :  { %1250 = vmatpush.msrb.mxu0 %v1207_v26  ;;  %v1228_v26 = vld [vmem:[#allocation10 + $0xc8] sm:$0xff] }
 0x18f   :  { %1310 = vmatpush.msrb.mxu1 %v1228_v26  ;;  %v2750_v26 = vmax.f32 %v2063_v34, 0.0 }
 0x190   :  { %v2324_v20 = vpop.f32.mrf.mxu0  ;;  %1251 = vmatpush.msrb.mxu0 %v1206_v5 }
 0x191   :  { %1063 = vmatmul.f32.gmra.mxu2 %v2738_v14  ;;  %v2743_v14 = vmax.f32 %v2018_v35, 0.0  ;;  %v2746_v35 = vmax.f32 %v2037_v48, 0.0 }
 0x192   :  { %1128 = vmatmul.f32.gmra.mxu3 %v2739_v45  ;;  %1252 = vmatpush.msrb.mxu0 %v1205_v32  ;;  %v2744_v45 = vmax.f32 %v2008_v54, 0.0  ;;  %v2342_v37 = vpop.f32.mrf.mxu1  ;;  %v2747_v54 = vmax.f32 %v2044_v2, 0.0  ;;  %v2748_v32 = vmax.f32 %v2034_v63, 0.0 }
 0x193   :  { %960 = vmatmul.f32.gmra.mxu0 %v2740_v29  ;;  %v2745_v29 = vmax.f32 %v2015_v0, 0.0  ;;  %v1227_v0 = vld [vmem:[#allocation10 + $0xc0] sm:$0xff] }
 0x194   :  { %1025 = vmatmul.f32.gmra.mxu1 %v2741_v19  ;;  %v2328_v62 = vpop.f32.mrf.mxu2  ;;  %1253 = vmatpush.msrb.mxu0 %v1204_v36  ;;  %v2357_v36 = vld [vmem:[%s2639_s4] sm:$0x3] }
 0x195   :  { %v2330_v60 = vpop.f32.mrf.mxu3  ;;  %1311 = vmatpush.msrb.mxu1 %v1227_v0  ;;  %v2366_v48 = vperm.slane %v2357_v36, 0 }
 0x196   :  { %1254 = vmatpush.msrb.mxu0 %v1203_v27 }
 0x197   :  { %v672_v34 = vadd.f32 %v2136_v18, %v2366_v48 }
 0x198   :  { %v2346_v3 = vpop.f32.mrf.mxu0 }
 0x199   :  { %1066 = vmatmul.f32.gmra.mxu2 %v2742_v44  ;;  %v2749_v44 = vmax.f32 %v2041_v11, 0.0  ;;  %v2751_v11 = vmax.f32 %v2070_v61, 0.0 }
 0x19a   :  { %1131 = vmatmul.f32.gmra.mxu3 %v2743_v14  ;;  %v2368_v2 = vpop.f32.mrf.mxu1 }
 0x19b   :  { %963 = vmatmul.f32.gmra.mxu0 %v2744_v45  ;;  %v669_v45 = vadd.f32 %v2118_v8, %v2366_v48 }
 0x19c   :  { %1028 = vmatmul.f32.gmra.mxu1 %v2745_v29  ;;  %v2340_v19 = vpop.f32.mrf.mxu2  ;;  %v2752_v29 = vmax.f32 %v2060_v46, 0.0  ;;  %v2754_v46 = vmax.f32 %v2089_v4, 0.0 }
 0x19d   :  { %v2344_v5 = vpop.f32.mrf.mxu3  ;;  %v734_v0 = vadd.f32 %v2142_v21, %v669_v45  ;;  %v2756_v21 = vmax.f32 %v2086_v23, 0.0  ;;  %v1225_v45 = vld [vmem:[#allocation10 + $0xb0] sm:$0xff] }
 0x19f   :  { %v799_v61 = vadd.f32 %v2296_v59, %v734_v0  ;;  %v737_v59 = vadd.f32 %v2166_v7, %v672_v34  ;;  %v1224_v7 = vld [vmem:[#allocation10 + $0xa8] sm:$0xff] }
 0x1a0   :  { %v2370_v63 = vpop.f32.mrf.mxu0 }
 0x1a1   :  { %1069 = vmatmul.f32.gmra.mxu2 %v2746_v35  ;;  %v1226_v35 = vld [vmem:[#allocation10 + $0xb8] sm:$0xff]  ;;  %v802_v23 = vadd.f32 %v2312_v41, %v737_v59 }
 0x1a2   :  { %1134 = vmatmul.f32.gmra.mxu3 %v2747_v54  ;;  %v2753_v54 = vmax.f32 %v2067_v16, 0.0  ;;  %1312 = vmatpush.msrb.mxu1 %v1226_v35  ;;  %v2390_v8 = vpop.f32.mrf.mxu1  ;;  %v2755_v16 = vmax.f32 %v2096_v43, 0.0  ;;  %v675_v43 = vadd.f32 %v2156_v30, %v2366_v48 }
 0x1a3   :  { %966 = vmatmul.f32.gmra.mxu0 %v2748_v32 }
 0x1a4   :  { %1031 = vmatmul.f32.gmra.mxu1 %v2749_v44  ;;  %v2361_v14 = vpop.f32.mrf.mxu2  ;;  %v740_v30 = vadd.f32 %v2192_v17, %v675_v43  ;;  %v2762_v43 = vmax.f32 %v2149_v25, 0.0  ;;  %v684_v25 = vadd.f32 %v2214_v51, %v2366_v48  ;;  %v687_v51 = vadd.f32 %v2234_v50, %v2366_v48 }
 0x1a5   :  { %v2363_v27 = vpop.f32.mrf.mxu3  ;;  %1313 = vmatpush.msrb.mxu1 %v1225_v45  ;;  %v1223_v45 = vld [vmem:[#allocation10 + $0xa0] sm:$0xff] }
 0x1a6   :  { %v752_v50 = vadd.f32 %v2284_v57, %v687_v51  ;;  %v2778_v51 = vld [vmem:[#allocation23_spill] sm:$0xff] }
 0x1a7   :  { %1314 = vmatpush.msrb.mxu1 %v1224_v7 }
 0x1a9   :  { %1072 = vmatmul.f32.gmra.mxu2 %v2750_v26  ;;  %v2394_v26 = vpop.f32.mrf.mxu0  ;;  %1315 = vmatpush.msrb.mxu1 %v1223_v45 }
 0x1aa   :  { %1137 = vmatmul.f32.gmra.mxu3 %v2751_v11  ;;  %v2757_v11 = vmax.f32 %v2093_v53, 0.0  ;;  %v2759_v53 = vmax.f32 %v2114_v58, 0.0  ;;  %v2415_v0 = vpop.f32.mrf.mxu1 }
 0x1ab   :  { %969 = vmatmul.f32.gmra.mxu0 %v2752_v29  ;;  %v864_v29 = vadd.f32 %v2298_v24, %v799_v61  ;;  %v867_v61 = vadd.f32 %v2314_v47, %v802_v23 }
 0x1ac   :  { %1034 = vmatmul.f32.gmra.mxu1 %v2753_v54  ;;  %v2382_v32 = vpop.f32.mrf.mxu2  ;;  %v2758_v54 = vmax.f32 %v2111_v55, 0.0  ;;  %v678_v55 = vadd.f32 %v2176_v28, %v2366_v48 }
 0x1ad   :  { %v2385_v44 = vpop.f32.mrf.mxu3  ;;  %v1171_v35 = vmax.f32 %v864_v29, 0.0  ;;  %v1173_v58 = vmax.f32 %v867_v61, 0.0 }
 0x1ae   :  { %v743_v17 = vadd.f32 %v2216_v38, %v678_v55  ;;  %v1222_v38 = vld [vmem:[#allocation10 + $0x98] sm:$0xff]  ;;  %v2765_v55 = vld [vmem:[#allocation17_spill] sm:$0xff] }
 0x1af   :  { %1316 = vmatpush.msrb.mxu1 %v1222_v38 }
 0x1b0   :  { %v808_v29 = vadd.f32 %v2340_v19, %v743_v17 }
 0x1b1   :  { %1075 = vmatmul.f32.gmra.mxu2 %v2754_v46  ;;  %v2417_v24 = vpop.f32.mrf.mxu0  ;;  %v805_v46 = vadd.f32 %v2328_v62, %v740_v30 }
 0x1b2   :  { %1140 = vmatmul.f32.gmra.mxu3 %v2755_v16  ;;  %v2760_v16 = vmax.f32 %v2129_v56, 0.0  ;;  %v2436_v59 = vpop.f32.mrf.mxu1  ;;  %v681_v56 = vadd.f32 %v2196_v42, %v2366_v48 }
 0x1b3   :  { %972 = vmatmul.f32.gmra.mxu0 %v2756_v21  ;;  %v2761_v21 = vmax.f32 %v2132_v49, 0.0  ;;  %v870_v47 = vadd.f32 %v2330_v60, %v805_v46  ;;  %v2767_v46 = vld [vmem:[#allocation18_spill] sm:$0xff] }
 0x1b4   :  { %1037 = vmatmul.f32.gmra.mxu1 %v2757_v11  ;;  %v2402_v18 = vpop.f32.mrf.mxu2 }
 0x1b5   :  { %v2406_v4 = vpop.f32.mrf.mxu3  ;;  %v1175_v49 = vmax.f32 %v870_v47, 0.0 }
 0x1b9   :  { %1078 = vmatmul.f32.gmra.mxu2 %v2758_v54  ;;  %v2440_v62 = vpop.f32.mrf.mxu0  ;;  %v746_v54 = vadd.f32 %v2240_v6, %v681_v56  ;;  %v1221_v6 = vld [vmem:[#allocation10 + $0x90] sm:$0xff] }
 0x1ba   :  { %1143 = vmatmul.f32.gmra.mxu3 %v2759_v53  ;;  %v873_v53 = vadd.f32 %v2344_v5, %v808_v29  ;;  %v2455_v42 = vpop.f32.mrf.mxu1  ;;  %1317 = vmatpush.msrb.mxu1 %v1221_v6 }
 0x1bb   :  { %1255 = vmatmul.f32.vlgmr.msrb.gmra.mxu0 %v1171_v35  ;;  %v2763_v35 = vld [vmem:[#allocation16_spill] sm:$0xff]  ;;  %v811_v61 = vadd.f32 %v2361_v14, %v746_v54  ;;  %v817_v54 = vadd.f32 %v2402_v18, %v752_v50 }
 0x1bc   :  { %v2419_v34 = vpop.f32.mrf.mxu2  ;;  %v2764_v23 = vmax.f32 %v2763_v35, 0.0  ;;  %v1177_v30 = vmax.f32 %v873_v53, 0.0  ;;  %v2772_v53 = vld [vmem:[#allocation20_spill] sm:$0xff] }
 0x1bd   :  { %v2423_v41 = vpop.f32.mrf.mxu3  ;;  %v876_v45 = vadd.f32 %v2363_v27, %v811_v61 }
 0x1bf   :  { %v1179_v14 = vmax.f32 %v876_v45, 0.0 }
 0x1c1   :  { %1081 = vmatmul.f32.gmra.mxu2 %v2760_v16  ;;  %v2457_v19 = vpop.f32.mrf.mxu0  ;;  %v2768_v16 = vmax.f32 %v2767_v46, 0.0 }
 0x1c2   :  { %1146 = vmatmul.f32.gmra.mxu3 %v2761_v21  ;;  %v749_v21 = vadd.f32 %v2264_v33, %v684_v25  ;;  %v2475_v56 = vpop.f32.mrf.mxu1  ;;  %v1220_v33 = vld [vmem:[#allocation10 + $0x88] sm:$0xff]  ;;  %v2773_v25 = vmax.f32 %v2772_v53, 0.0 }
 0x1c3   :  { %1258 = vmatmul.f32.gmra.mxu0 %v1173_v58  ;;  %v2766_v58 = vmax.f32 %v2765_v55, 0.0  ;;  %1318 = vmatpush.msrb.mxu1 %v1220_v33 }
 0x1c4   :  { %v2432_v11 = vpop.f32.mrf.mxu2  ;;  %v814_v47 = vadd.f32 %v2382_v32, %v749_v21  ;;  %v2776_v21 = vld [vmem:[#allocation22_spill] sm:$0xff] }
 0x1c5   :  { %v2438_v28 = vpop.f32.mrf.mxu3  ;;  %v2777_v45 = vmax.f32 %v2776_v21, 0.0 }
 0x1c9   :  { %1084 = vmatmul.f32.gmra.mxu2 %v2762_v43  ;;  %v2479_v29 = vpop.f32.mrf.mxu0  ;;  %v2770_v43 = vld [vmem:[#allocation19_spill] sm:$0xff] }
 0x1ca   :  { %1149 = vmatmul.f32.gmra.mxu3 %v2764_v23  ;;  %v2771_v35 = vmax.f32 %v2770_v43, 0.0  ;;  %v879_v23 = vadd.f32 %v2385_v44, %v814_v47  ;;  %v993_v55 = vpop.f32.mrf.mxu1  ;;  %v693_v47 = vadd.f32 %v2274_v9, %v2366_v48  ;;  %v2782_v9 = vmax.f32 %v2250_v22, 0.0 }
 0x1cb   :  { %1261 = vmatmul.f32.gmra.mxu0 %v1175_v49  ;;  %v2769_v49 = vmax.f32 %v2187_v10, 0.0  ;;  %v690_v10 = vadd.f32 %v2254_v1, %v2366_v48  ;;  %v882_v1 = vadd.f32 %v2406_v4, %v817_v54  ;;  %v2783_v22 = vmax.f32 %v2270_v39, 0.0 }
 0x1cc   :  { %v2449_v60 = vpop.f32.mrf.mxu2  ;;  %v1181_v38 = vmax.f32 %v879_v23, 0.0  ;;  %v2780_v23 = vld [vmem:[#allocation24_spill] sm:$0xff] }
 0x1cd   :  { %v2453_v7 = vpop.f32.mrf.mxu3  ;;  %v755_v46 = vadd.f32 %v2300_v52, %v690_v10  ;;  %v1183_v18 = vmax.f32 %v882_v1, 0.0  ;;  %v2781_v10 = vmax.f32 %v2780_v23, 0.0 }
 0x1cf   :  { %v820_v6 = vadd.f32 %v2419_v34, %v755_v46  ;;  %v758_v34 = vadd.f32 %v2320_v12, %v693_v47 }
 0x1d1   :  { %1087 = vmatmul.f32.gmra.mxu2 %v2766_v58  ;;  %v1219_v58 = vld [vmem:[#allocation10 + $0x80] sm:$0xff]  ;;  %v2496_v57 = vpop.f32.mrf.mxu0  ;;  %v885_v52 = vadd.f32 %v2423_v41, %v820_v6  ;;  %v823_v50 = vadd.f32 %v2432_v11, %v758_v34 }
 0x1d2   :  { %1152 = vmatmul.f32.gmra.mxu3 %v2768_v16  ;;  %1319 = vmatpush.msrb.mxu1 %v1219_v58  ;;  %v996_v4 = vpop.f32.mrf.mxu1 }
 0x1d3   :  { %1264 = vmatmul.f32.gmra.mxu0 %v1177_v30  ;;  %v2774_v30 = vld [vmem:[#allocation21_spill] sm:$0xff]  ;;  %v1185_v33 = vmax.f32 %v885_v52, 0.0  ;;  %v888_v54 = vadd.f32 %v2438_v28, %v823_v50  ;;  %v2542_v28 = vperm.slane %v2357_v36, 1  ;;  %v702_v36 = vadd.f32 %v2324_v20, %v2366_v48 }
 0x1d4   :  { %v2466_v5 = vpop.f32.mrf.mxu2  ;;  %v2775_v61 = vmax.f32 %v2774_v30, 0.0  ;;  %v705_v20 = vadd.f32 %v2346_v3, %v2366_v48 }
 0x1d5   :  { %v2470_v17 = vpop.f32.mrf.mxu3  ;;  %v1187_v30 = vmax.f32 %v888_v54, 0.0  ;;  %v929_v31 = vadd.f32 %v2440_v62, %v2542_v28  ;;  %v932_v62 = vadd.f32 %v2457_v19, %v2542_v28 }
 0x1d6   :  { %v770_v19 = vadd.f32 %v2415_v0, %v705_v20 }
 0x1d9   :  { %1090 = vmatmul.f32.gmra.mxu2 %v2769_v49 }
 0x1da   :  { %1155 = vmatmul.f32.gmra.mxu3 %v2771_v35  ;;  %v2516_v35 = vpop.f32.mrf.mxu0 }
 0x1db   :  { %1267 = vmatmul.f32.gmra.mxu0 %v1179_v14  ;;  %v2779_v14 = vmax.f32 %v2778_v51, 0.0 }
 0x1dc   :  { %v2483_v27 = vpop.f32.mrf.mxu2 }
 0x1dd   :  { %v2487_v32 = vpop.f32.mrf.mxu3 }
 0x1e1   :  { %1093 = vmatmul.f32.gmra.mxu2 %v2773_v25  ;;  %v999_v25 = vpop.f32.mrf.mxu1 }
 0x1e2   :  { %1158 = vmatmul.f32.gmra.mxu3 %v2775_v61  ;;  %v2532_v11 = vpop.f32.mrf.mxu0 }
 0x1e3   :  { %1270 = vmatmul.f32.gmra.mxu0 %v1181_v38  ;;  %v696_v38 = vadd.f32 %v2286_v13, %v2366_v48  ;;  %v699_v13 = vadd.f32 %v2304_v40, %v2366_v48 }
 0x1e4   :  { %v2498_v44 = vpop.f32.mrf.mxu2 }
 0x1e5   :  { %v2502_v16 = vpop.f32.mrf.mxu3  ;;  %v761_v12 = vadd.f32 %v2342_v37, %v696_v38  ;;  %v835_v3 = vadd.f32 %v2498_v44, %v770_v19  ;;  %v938_v44 = vadd.f32 %v2496_v57, %v2542_v28  ;;  %v941_v57 = vadd.f32 %v2516_v35, %v2542_v28 }
 0x1e7   :  { %v826_v61 = vadd.f32 %v2449_v60, %v761_v12  ;;  %v764_v60 = vadd.f32 %v2368_v2, %v699_v13  ;;  %v767_v2 = vadd.f32 %v2390_v8, %v702_v36  ;;  %v900_v12 = vadd.f32 %v2502_v16, %v835_v3 }
 0x1e9   :  { %1096 = vmatmul.f32.gmra.mxu2 %v2777_v45  ;;  %v891_v58 = vadd.f32 %v2453_v7, %v826_v61  ;;  %v829_v1 = vadd.f32 %v2466_v5, %v764_v60  ;;  %v832_v5 = vadd.f32 %v2483_v27, %v767_v2  ;;  %v935_v27 = vadd.f32 %v2479_v29, %v2542_v28 }
 0x1ea   :  { %1161 = vmatmul.f32.gmra.mxu3 %v2779_v14  ;;  %v2553_v40 = vpop.f32.mrf.mxu0  ;;  %v1195_v13 = vmax.f32 %v900_v12, 0.0 }
 0x1eb   :  { %1273 = vmatmul.f32.gmra.mxu0 %v1183_v18  ;;  %v1189_v39 = vmax.f32 %v891_v58, 0.0  ;;  %v994_v18 = vadd.f32 %v993_v55, %v929_v31  ;;  %v894_v7 = vadd.f32 %v2470_v17, %v829_v1  ;;  %v997_v55 = vadd.f32 %v996_v4, %v932_v62 }
 0x1ec   :  { %v2511_v49 = vpop.f32.mrf.mxu2  ;;  %v897_v8 = vadd.f32 %v2487_v32, %v832_v5  ;;  %v1000_v38 = vadd.f32 %v999_v25, %v935_v27  ;;  %v711_v58 = vadd.f32 %v2394_v26, %v2366_v48  ;;  %v944_v62 = vadd.f32 %v2532_v11, %v2542_v28 }
 0x1ed   :  { %v2514_v43 = vpop.f32.mrf.mxu3  ;;  %v1191_v14 = vmax.f32 %v894_v7, 0.0 }
 0x1f1   :  { %1099 = vmatmul.f32.gmra.mxu2 %v2781_v10  ;;  %v1193_v10 = vmax.f32 %v897_v8, 0.0 }
 0x1f2   :  { %1164 = vmatmul.f32.gmra.mxu3 %v2782_v9  ;;  %v2564_v17 = vpop.f32.mrf.mxu0  ;;  %v708_v9 = vadd.f32 %v2370_v63, %v2366_v48 }
 0x1f3   :  { %1276 = vmatmul.f32.gmra.mxu0 %v1185_v33 }
 0x1f4   :  { %v2526_v41 = vpop.f32.mrf.mxu2  ;;  %v773_v29 = vadd.f32 %v2436_v59, %v708_v9  ;;  %v776_v59 = vadd.f32 %v2455_v42, %v711_v58 }
 0x1f5   :  { %v2529_v53 = vpop.f32.mrf.mxu3 }
 0x1f6   :  { %v838_v63 = vadd.f32 %v2511_v49, %v773_v29  ;;  %v841_v7 = vadd.f32 %v2526_v41, %v776_v59 }
 0x1f8   :  { %v903_v31 = vadd.f32 %v2514_v43, %v838_v63 }
 0x1f9   :  { %1102 = vmatmul.f32.gmra.mxu2 %v515_v15  ;;  %v1002_v15 = vpop.f32.mrf.mxu1 }
 0x1fa   :  { %1167 = vmatmul.f32.gmra.mxu3 %v2783_v22  ;;  %v2574_v61 = vpop.f32.mrf.mxu0  ;;  %v1003_v60 = vadd.f32 %v1002_v15, %v938_v44  ;;  %v714_v15 = vadd.f32 %v2417_v24, %v2366_v48 }
 0x1fb   :  { %1279 = vmatmul.f32.gmra.mxu0 %v1187_v30  ;;  %v953_v12 = vadd.f32 %v2574_v61, %v2542_v28 }
 0x1fc   :  { %v2544_v37 = vpop.f32.mrf.mxu2  ;;  %v779_v35 = vadd.f32 %v2475_v56, %v714_v15  ;;  %v947_v56 = vadd.f32 %v2553_v40, %v2542_v28 }
 0x1fd   :  { %v2547_v46 = vpop.f32.mrf.mxu3 }
 0x1fe   :  { %v844_v5 = vadd.f32 %v2544_v37, %v779_v35 }
 0x201   :  { %v1005_v52 = vpop.f32.mrf.mxu1 }
 0x202   :  { %v955_v49 = vpop.f32.mrf.mxu0 }
 0x203   :  { %1282 = vmatmul.f32.gmra.mxu0 %v1189_v39 }
 0x204   :  { %v1058_v6 = vpop.f32.mrf.mxu2 }
 0x205   :  { %v1059_v21 = vadd.f32 %v1058_v6, %v994_v18  ;;  %v1123_v45 = vpop.f32.mrf.mxu3  ;;  %v1197_v6 = vmax.f32 %v903_v31, 0.0 }
 0x207   :  { %v1124_v51 = vadd.f32 %v1123_v45, %v1059_v21  ;;  %v1006_v21 = vadd.f32 %v1005_v52, %v941_v57  ;;  %v906_v45 = vadd.f32 %v2529_v53, %v841_v7  ;;  %v909_v53 = vadd.f32 %v2547_v46, %v844_v5 }
 0x209   :  { %v1172_v47 = vmax.f32 %v1124_v51, 0.0  ;;  %v1008_v32 = vpop.f32.mrf.mxu1  ;;  %v1199_v41 = vmax.f32 %v906_v45, 0.0  ;;  %v1201_v11 = vmax.f32 %v909_v53, 0.0 }
 0x20a   :  { %v958_v48 = vpop.f32.mrf.mxu0  ;;  %v1009_v24 = vadd.f32 %v1008_v32, %v944_v62 }
 0x20b   :  { %1285 = vmatmul.f32.gmra.mxu0 %v1191_v14  ;;  %1320 = vmatmul.f32.vlgmr.msrb.gmra.mxu1 %v1172_v47  ;;  %v959_v61 = vadd.f32 %v958_v48, %v2542_v28 }
 0x20c   :  { %v1061_v34 = vpop.f32.mrf.mxu2 }
 0x20d   :  { %v1062_v33 = vadd.f32 %v1061_v34, %v997_v55  ;;  %v1126_v50 = vpop.f32.mrf.mxu3 }
 0x20f   :  { %v1127_v23 = vadd.f32 %v1126_v50, %v1062_v33 }
 0x211   :  { %v1174_v4 = vmax.f32 %v1127_v23, 0.0  ;;  %v1011_v36 = vpop.f32.mrf.mxu1 }
 0x212   :  { %v1012_v33 = vadd.f32 %v1011_v36, %v947_v56  ;;  %v961_v37 = vpop.f32.mrf.mxu0 }
 0x213   :  { %1288 = vmatmul.f32.gmra.mxu0 %v1193_v10  ;;  %1323 = vmatmul.f32.gmra.mxu1 %v1174_v4  ;;  %v950_v10 = vadd.f32 %v2564_v17, %v2542_v28  ;;  %v956_v17 = vadd.f32 %v955_v49, %v2542_v28  ;;  %v962_v15 = vadd.f32 %v961_v37, %v2542_v28 }
 0x214   :  { %v1064_v54 = vpop.f32.mrf.mxu2 }
 0x215   :  { %v1065_v30 = vadd.f32 %v1064_v54, %v1000_v38  ;;  %v1129_v0 = vpop.f32.mrf.mxu3 }
 0x217   :  { %v1130_v22 = vadd.f32 %v1129_v0, %v1065_v30 }
 0x219   :  { %v1176_v25 = vmax.f32 %v1130_v22, 0.0  ;;  %v1014_v14 = vpop.f32.mrf.mxu1 }
 0x21a   :  { %v1015_v4 = vadd.f32 %v1014_v14, %v950_v10  ;;  %v964_v32 = vpop.f32.mrf.mxu0 }
 0x21b   :  { %1291 = vmatmul.f32.gmra.mxu0 %v1195_v13  ;;  %1326 = vmatmul.f32.gmra.mxu1 %v1176_v25  ;;  %v965_v14 = vadd.f32 %v964_v32, %v2542_v28 }
 0x21c   :  { %v1067_v16 = vpop.f32.mrf.mxu2 }
 0x21d   :  { %v1068_v39 = vadd.f32 %v1067_v16, %v1003_v60  ;;  %v1132_v1 = vpop.f32.mrf.mxu3 }
 0x21f   :  { %v1133_v18 = vadd.f32 %v1132_v1, %v1068_v39 }
 0x221   :  { %v1178_v26 = vmax.f32 %v1133_v18, 0.0  ;;  %v1017_v50 = vpop.f32.mrf.mxu1 }
 0x222   :  { %v1018_v29 = vadd.f32 %v1017_v50, %v953_v12  ;;  %v967_v58 = vpop.f32.mrf.mxu0 }
 0x223   :  { %1294 = vmatmul.f32.gmra.mxu0 %v1197_v6  ;;  %1329 = vmatmul.f32.gmra.mxu1 %v1178_v26 }
 0x224   :  { %v1070_v43 = vpop.f32.mrf.mxu2 }
 0x225   :  { %v1071_v42 = vadd.f32 %v1070_v43, %v1006_v21  ;;  %v1135_v2 = vpop.f32.mrf.mxu3 }
 0x227   :  { %v1136_v51 = vadd.f32 %v1135_v2, %v1071_v42 }
 0x229   :  { %v1180_v47 = vmax.f32 %v1136_v51, 0.0  ;;  %v1020_v40 = vpop.f32.mrf.mxu1 }
 0x22a   :  { %v1021_v16 = vadd.f32 %v1020_v40, %v956_v17  ;;  %v970_v18 = vpop.f32.mrf.mxu0  ;;  %v2611_v17 = vld [vmem:[%s2641_s6] ss:$0 sm:$0xff]  ;;  %s1614_s6 = smov [#allocation11]  }
 0x22b   :  { %1297 = vmatmul.f32.gmra.mxu0 %v1199_v41  ;;  %1332 = vmatmul.f32.gmra.mxu1 %v1180_v47  ;;  %v971_v37 = vadd.f32 %v970_v18, %v2542_v28  ;;  %s1389_s30 = sshll.u32 %s1614_s6, 4  ;;  %s1390_s30 = int_to_ptr.vmem [resolvable:$true] %s1389_s30 }
 0x22c   :  { %v1073_v20 = vpop.f32.mrf.mxu2 }
 0x22d   :  { %v1074_v55 = vadd.f32 %v1073_v20, %v1009_v24  ;;  %v1138_v52 = vpop.f32.mrf.mxu3 }
 0x22f   :  { %v1139_v34 = vadd.f32 %v1138_v52, %v1074_v55  ;;  %v968_v52 = vadd.f32 %v967_v58, %v2542_v28 }
 0x231   :  { %v1182_v8 = vmax.f32 %v1139_v34, 0.0  ;;  %v1023_v63 = vpop.f32.mrf.mxu1 }
 0x232   :  { %v1024_v6 = vadd.f32 %v1023_v63, %v959_v61  ;;  %v973_v2 = vpop.f32.mrf.mxu0 }
 0x233   :  { %1300 = vmatmul.f32.gmra.mxu0 %v1201_v11  ;;  %1335 = vmatmul.f32.gmra.mxu1 %v1182_v8  ;;  %v974_v40 = vadd.f32 %v973_v2, %v2542_v28 }
 0x234   :  { %v1076_v19 = vpop.f32.mrf.mxu2 }
 0x235   :  { %v1077_v27 = vadd.f32 %v1076_v19, %v1012_v33  ;;  %v1141_v23 = vpop.f32.mrf.mxu3 }
 0x237   :  { %v1142_v46 = vadd.f32 %v1141_v23, %v1077_v27 }
 0x239   :  { %v1184_v3 = vmax.f32 %v1142_v46, 0.0  ;;  %v1026_v57 = vpop.f32.mrf.mxu1 }
 0x23a   :  { %v1027_v45 = vadd.f32 %v1026_v57, %v962_v15  ;;  %v1256_v55 = vpop.f32.mrf.mxu0 }
 0x23b   :  { %1338 = vmatmul.f32.gmra.mxu1 %v1184_v3  ;;  %v1257_v28 = vadd.f32 %v2611_v17, %v1256_v55 }
 0x23c   :  { %v1079_v9 = vpop.f32.mrf.mxu2 }
 0x23d   :  { %v1080_v38 = vadd.f32 %v1079_v9, %v1015_v4  ;;  %v1144_v54 = vpop.f32.mrf.mxu3 }
 0x23f   :  { %v1145_v30 = vadd.f32 %v1144_v54, %v1080_v38 }
 0x241   :  { %v1186_v0 = vmax.f32 %v1145_v30, 0.0  ;;  %v1029_v42 = vpop.f32.mrf.mxu1 }
 0x242   :  { %v1030_v47 = vadd.f32 %v1029_v42, %v965_v14  ;;  %v1259_v23 = vpop.f32.mrf.mxu0 }
 0x243   :  { %1341 = vmatmul.f32.gmra.mxu1 %v1186_v0 }
 0x244   :  { %v1082_v44 = vpop.f32.mrf.mxu2 }
 0x245   :  { %v1083_v22 = vadd.f32 %v1082_v44, %v1018_v29  ;;  %v1147_v13 = vpop.f32.mrf.mxu3 }
 0x247   :  { %v1148_v25 = vadd.f32 %v1147_v13, %v1083_v22 }
 0x249   :  { %v1188_v60 = vmax.f32 %v1148_v25, 0.0  ;;  %v1032_v53 = vpop.f32.mrf.mxu1 }
 0x24a   :  { %v1033_v11 = vadd.f32 %v1032_v53, %v968_v52  ;;  %v1262_v12 = vpop.f32.mrf.mxu0 }
 0x24b   :  { %1344 = vmatmul.f32.gmra.mxu1 %v1188_v60 }
 0x24c   :  { %v1085_v31 = vpop.f32.mrf.mxu2 }
 0x24d   :  { %v1086_v39 = vadd.f32 %v1085_v31, %v1021_v16  ;;  %v1150_v1 = vpop.f32.mrf.mxu3  ;;  %v1260_v16 = vadd.f32 %v2611_v17, %v1259_v23 }
 0x24f   :  { %v1151_v59 = vadd.f32 %v1150_v1, %v1086_v39  ;;  %v1263_v1 = vadd.f32 %v2611_v17, %v1262_v12 }
 0x251   :  { %v1190_v36 = vmax.f32 %v1151_v59, 0.0  ;;  %v1035_v27 = vpop.f32.mrf.mxu1 }
 0x252   :  { %v1036_v46 = vadd.f32 %v1035_v27, %v971_v37  ;;  %v1265_v63 = vpop.f32.mrf.mxu0 }
 0x253   :  { %1347 = vmatmul.f32.gmra.mxu1 %v1190_v36  ;;  %v1266_v36 = vadd.f32 %v2611_v17, %v1265_v63 }
 0x254   :  { %v1088_v7 = vpop.f32.mrf.mxu2 }
 0x255   :  { %v1089_v26 = vadd.f32 %v1088_v7, %v1024_v6  ;;  %v1153_v49 = vpop.f32.mrf.mxu3 }
 0x257   :  { %v1154_v21 = vadd.f32 %v1153_v49, %v1089_v26 }
 0x259   :  { %v1192_v43 = vmax.f32 %v1154_v21, 0.0  ;;  %v1038_v32 = vpop.f32.mrf.mxu1 }
 0x25a   :  { %v1039_v30 = vadd.f32 %v1038_v32, %v974_v40  ;;  %v1268_v60 = vpop.f32.mrf.mxu0 }
 0x25b   :  { %1350 = vmatmul.f32.gmra.mxu1 %v1192_v43  ;;  %v1269_v26 = vadd.f32 %v2611_v17, %v1268_v60 }
 0x25c   :  { %v1091_v35 = vpop.f32.mrf.mxu2 }
 0x25d   :  { %v1092_v62 = vadd.f32 %v1091_v35, %v1027_v45  ;;  %v1156_v51 = vpop.f32.mrf.mxu3 }
 0x25f   :  { %v1157_v41 = vadd.f32 %v1156_v51, %v1092_v62 }
 0x261   :  { %v1194_v5 = vmax.f32 %v1157_v41, 0.0 }
 0x262   :  { %v1271_v61 = vpop.f32.mrf.mxu0 }
 0x263   :  { %1353 = vmatmul.f32.gmra.mxu1 %v1194_v5  ;;  %v1272_v43 = vadd.f32 %v2611_v17, %v1271_v61 }
 0x264   :  { %v1094_v48 = vpop.f32.mrf.mxu2 }
 0x265   :  { %v1095_v24 = vadd.f32 %v1094_v48, %v1030_v47  ;;  %v1159_v20 = vpop.f32.mrf.mxu3 }
 0x267   :  { %v1160_v56 = vadd.f32 %v1159_v20, %v1095_v24 }
 0x269   :  { %v1196_v34 = vmax.f32 %v1160_v56, 0.0 }
 0x26a   :  { %v1274_v7 = vpop.f32.mrf.mxu0 }
 0x26b   :  { %1356 = vmatmul.f32.gmra.mxu1 %v1196_v34  ;;  %v1275_v35 = vadd.f32 %v2611_v17, %v1274_v7 }
 0x26c   :  { %v1097_v8 = vpop.f32.mrf.mxu2 }
 0x26d   :  { %v1098_v33 = vadd.f32 %v1097_v8, %v1033_v11  ;;  %v1162_v50 = vpop.f32.mrf.mxu3 }
 0x26f   :  { %v1163_v19 = vadd.f32 %v1162_v50, %v1098_v33 }
 0x271   :  { %v1198_v10 = vmax.f32 %v1163_v19, 0.0 }
 0x272   :  { %v1277_v21 = vpop.f32.mrf.mxu0 }
 0x273   :  { %1359 = vmatmul.f32.gmra.mxu1 %v1198_v10  ;;  %v1278_v14 = vadd.f32 %v2611_v17, %v1277_v21 }
 0x274   :  { %v1100_v3 = vpop.f32.mrf.mxu2 }
 0x275   :  { %v1101_v4 = vadd.f32 %v1100_v3, %v1036_v46  ;;  %v1165_v9 = vpop.f32.mrf.mxu3 }
 0x277   :  { %v1166_v38 = vadd.f32 %v1165_v9, %v1101_v4 }
 0x279   :  { %v1200_v54 = vmax.f32 %v1166_v38, 0.0 }
 0x27a   :  { %v1280_v2 = vpop.f32.mrf.mxu0 }
 0x27b   :  { %1362 = vmatmul.f32.gmra.mxu1 %v1200_v54  ;;  %v1281_v48 = vadd.f32 %v2611_v17, %v1280_v2 }
 0x27c   :  { %v1103_v0 = vpop.f32.mrf.mxu2 }
 0x27d   :  { %v1104_v29 = vadd.f32 %v1103_v0, %v1039_v30  ;;  %v1168_v44 = vpop.f32.mrf.mxu3 }
 0x27f   :  { %v1169_v22 = vadd.f32 %v1168_v44, %v1104_v29 }
 0x281   :  { %v1202_v13 = vmax.f32 %v1169_v22, 0.0 }
 0x282   :  { %v1283_v41 = vpop.f32.mrf.mxu0 }
 0x283   :  { %1365 = vmatmul.f32.gmra.mxu1 %v1202_v13  ;;  %v1284_v55 = vadd.f32 %v2611_v17, %v1283_v41 }
 0x288   :  { %v1321_v25 = vpop.f32.mrf.mxu1 }
 0x289   :  { %v1322_v58 = vadd.f32 %v1321_v25, %v1257_v28 }
 0x28a   :  { %v1286_v53 = vpop.f32.mrf.mxu0 }
 0x28b   :  { %1369 = vst [vmem:[#allocation11] sm:$0xff] %v1322_v58  ;;  %v1287_v11 = vadd.f32 %v2611_v17, %v1286_v53 }
 0x290   :  { %v1324_v31 = vpop.f32.mrf.mxu1 }
 0x291   :  { %v1325_v39 = vadd.f32 %v1324_v31, %v1260_v16 }
 0x292   :  { %v1289_v34 = vpop.f32.mrf.mxu0 }
 0x293   :  { %1370 = vst [vmem:[#allocation11 + $0x8] sm:$0xff] %v1325_v39  ;;  %v1290_v37 = vadd.f32 %v2611_v17, %v1289_v34 }
 0x298   :  { %v1327_v59 = vpop.f32.mrf.mxu1 }
 0x299   :  { %v1328_v57 = vadd.f32 %v1327_v59, %v1263_v1 }
 0x29a   :  { %v1292_v50 = vpop.f32.mrf.mxu0 }
 0x29b   :  { %1371 = vst [vmem:[#allocation11 + $0x10] sm:$0xff] %v1328_v57  ;;  %v1293_v23 = vadd.f32 %v2611_v17, %v1292_v50 }
 0x2a0   :  { %v1330_v18 = vpop.f32.mrf.mxu1 }
 0x2a1   :  { %v1331_v6 = vadd.f32 %v1330_v18, %v1266_v36 }
 0x2a2   :  { %v1295_v10 = vpop.f32.mrf.mxu0 }
 0x2a3   :  { %1372 = vst [vmem:[#allocation11 + $0x18] sm:$0xff] %v1331_v6  ;;  %v1296_v4 = vadd.f32 %v2611_v17, %v1295_v10 }
 0x2a8   :  { %v1333_v49 = vpop.f32.mrf.mxu1 }
 0x2a9   :  { %v1334_v15 = vadd.f32 %v1333_v49, %v1269_v26 }
 0x2aa   :  { %v1298_v38 = vpop.f32.mrf.mxu0 }
 0x2ab   :  { %1373 = vst [vmem:[#allocation11 + $0x20] sm:$0xff] %v1334_v15  ;;  %v1299_v54 = vadd.f32 %v2611_v17, %v1298_v38 }
 0x2b0   :  { %v1336_v45 = vpop.f32.mrf.mxu1 }
 0x2b1   :  { %v1337_v42 = vadd.f32 %v1336_v45, %v1272_v43 }
 0x2b2   :  { %v1301_v30 = vpop.f32.mrf.mxu0 }
 0x2b3   :  { %1374 = vst [vmem:[#allocation11 + $0x28] sm:$0xff] %v1337_v42  ;;  %v1302_v0 = vadd.f32 %v2611_v17, %v1301_v30 }
 0x2b8   :  { %v1339_v62 = vpop.f32.mrf.mxu1 }
 0x2b9   :  { %v1340_v51 = vadd.f32 %v1339_v62, %v1275_v35 }
 0x2bb   :  { %1375 = vst [vmem:[#allocation11 + $0x30] sm:$0xff] %v1340_v51 }
 0x2c0   :  { %v1342_v5 = vpop.f32.mrf.mxu1 }
 0x2c1   :  { %v1343_v47 = vadd.f32 %v1342_v5, %v1278_v14 }
 0x2c3   :  { %1376 = vst [vmem:[#allocation11 + $0x38] sm:$0xff] %v1343_v47 }
 0x2c8   :  { %v1345_v24 = vpop.f32.mrf.mxu1 }
 0x2c9   :  { %v1346_v20 = vadd.f32 %v1345_v24, %v1281_v48 }
 0x2cb   :  { %1377 = vst [vmem:[#allocation11 + $0x40] sm:$0xff] %v1346_v20 }
 0x2d0   :  { %v1348_v52 = vpop.f32.mrf.mxu1 }
 0x2d1   :  { %v1349_v56 = vadd.f32 %v1348_v52, %v1284_v55 }
 0x2d3   :  { %1378 = vst [vmem:[#allocation11 + $0x48] sm:$0xff] %v1349_v56 }
 0x2d8   :  { %v1351_v8 = vpop.f32.mrf.mxu1 }
 0x2d9   :  { %v1352_v33 = vadd.f32 %v1351_v8, %v1287_v11 }
 0x2db   :  { %1379 = vst [vmem:[#allocation11 + $0x50] sm:$0xff] %v1352_v33 }
 0x2e0   :  { %v1354_v19 = vpop.f32.mrf.mxu1 }
 0x2e1   :  { %v1355_v27 = vadd.f32 %v1354_v19, %v1290_v37 }
 0x2e3   :  { %1380 = vst [vmem:[#allocation11 + $0x58] sm:$0xff] %v1355_v27 }
 0x2e8   :  { %v1357_v46 = vpop.f32.mrf.mxu1 }
 0x2e9   :  { %v1358_v3 = vadd.f32 %v1357_v46, %v1293_v23 }
 0x2eb   :  { %1381 = vst [vmem:[#allocation11 + $0x60] sm:$0xff] %v1358_v3 }
 0x2f0   :  { %v1360_v9 = vpop.f32.mrf.mxu1 }
 0x2f1   :  { %v1361_v40 = vadd.f32 %v1360_v9, %v1296_v4 }
 0x2f3   :  { %1382 = vst [vmem:[#allocation11 + $0x68] sm:$0xff] %v1361_v40 }
 0x2f8   :  { %v1363_v32 = vpop.f32.mrf.mxu1 }
 0x2f9   :  { %v1364_v12 = vadd.f32 %v1363_v32, %v1299_v54 }
 0x2fb   :  { %1383 = vst [vmem:[#allocation11 + $0x70] sm:$0xff] %v1364_v12 }
 0x300   :  { %v1366_v29 = vpop.f32.mrf.mxu1 }
 0x301   :  { %v1367_v44 = vadd.f32 %v1366_v29, %v1302_v0 }
 0x303   :  { %1384 = vst [vmem:[#allocation11 + $0x78] sm:$0xff] %v1367_v44 }
 0x304   :  { %1397 = dma.vmem_to_hbm [thread:$0]  %s1390_s30, 2048, %s1392_s10, [#allocation4], %s1610_s21, %s1610_s21, %s1611_s22  }
 0x305   :  { %1601 = dma.done.wait [#allocation4], 2048  }
 0x306   :  { %1602 = vsyncadd [#allocation4], 4294965248 }
 0x307   :  { %1402 = vsyncpa [#allocation3], 1 }
 0x308   :  { %1403 = vsyncpa [#allocation6], 1 }
 0x309   :  { %1404 = vsyncpa [#allocation9], 1 }
 0x30a   :  { %1405 = vsyncpa [#allocation4], 1 }

</bundles_post_ra>
